<compile_context>
chip_gen: v6e
topology: v6e:2x2x1
jax: 0.10.0
libtpu: 0.0.40
codegen_flags: <defaults>
</compile_context>

<pallas_src>
import functools

import numpy as np
import jax
import jax.numpy as jnp
from jax.experimental import pallas as pl
from jax.experimental.pallas import tpu as pltpu

# ------------------------- config (small test shapes) -------------------------
SR = 22050
N_FFT = 256          # small stand-in for 2048
HOP = 128
N_MELS = 64
N_CLASSES = 24
BATCH = 2
AUDIO_LEN = 2048

AMIN = 1e-10
REF = 1.0
DB_OFFSET = float(10.0 * np.log10(np.maximum(AMIN, REF)))   # = 0.0
BN_EPS = 1e-5
GEM_P = 3.0
GEM_EPS = 1e-6

# Hard-coded mel center frequencies from CustomLogmelFilterBank.mel
MEL_F = np.array([
    200, 200.65839880255413, 201.37750848432012, 201.51126380583162, 201.67386956899037,
    201.87582543688856, 202.13345527203808, 202.47362290912503, 202.94395795945513,
    203.63802229847101, 204.7696777583669, 206.9686321525935, 212.88885671471746,
    217.43048869703566, 217.67573891228102, 217.99718059148606, 218.43718046012455,
    219.07709875345563, 220.09657180388132, 221.99293137020203, 226.94388589196586,
    232.62734674169212, 235.10231672457329, 236.44419592188694, 239.27104445621455,
    247.84189145158842, 258.1332636574189, 266.45592538764413, 287.9890352180489,
    310.53399991020956, 329.7280481648527, 365.2636543430171, 412.1971069913186,
    474.9992071267056, 543.8012938633804, 613.9981630065175, 684.4309008264818,
    746.926859193976, 824.9481206944652, 934.1647408605522, 1059.406578152521,
    1191.4714986828917, 1315.3661976656404, 1417.0854269491579, 1511.4688454929535,
    1612.80056993873, 1721.6428871330952, 1838.288761545141, 1955.3394189452179,
    2064.968083010285, 2166.8084495171515, 2260.0916983488605, 2338.3314875237083,
    2401.906399148228, 2463.7128966413247, 2524.8571234176743, 2580.0580920624607,
    2628.9702036006215, 2682.628540587129, 2735.574322816629, 2782.2949980039793,
    2823.2077006567883, 2863.515614399661, 2908.3053773334987, 2947.9254283746377,
    2987.2898160362897, 3026.660057289936, 3066.3058926403455, 3110.9589651232495,
    3150.8433299423505, 3190.7647125250114, 3235.4147868690166, 3275.3314141881165,
    3315.610520650735, 3360.6813727382987, 3400.707128832307, 3440.631288594453,
    3485.2582072693517, 3525.048226029132, 3565.061232929195, 3610.3530117659466,
    3656.158234266066, 3702.626404589744, 3749.713173618707, 3797.136734159918,
    3844.688148985763, 3892.179804142279, 3939.684061309631, 3992.7908662105892,
    4046.0964639926615, 4094.048026768339, 4147.715225077025, 4201.803328840861,
    4250.415130590165, 4304.400570488394, 4358.891311144112, 4413.626381238448,
    4468.247903671312, 4523.200949785816, 4584.385109100807, 4646.338108408218,
    4708.794686519528, 4771.600484347028, 4834.854981582876, 4904.5553996394865,
    4974.441512229322, 5045.491312421904, 5130.717507368683, 5223.421347621407,
    5317.079138212701, 5418.7071099135665, 5535.597836296701, 5667.909048600521,
    5808.1872217746295, 5956.457881201861, 6127.4753815696895, 6314.274205611619,
    6509.692128073985, 6736.107119503475, 7008.663641495503, 7312.530456313335,
    7655.887319816534, 8100.341736238419, 8973.536714095795, 10144.613928413162,
    11315.69114273053, 12486.768357047898, 13657.845571365266, 14828.922785682633,
    16000,
], dtype=np.float64)


def _round_up(x, m):
    return ((x + m - 1) // m) * m


def _default_row_tile():
    # Match the MXU M dimension per generation: 128 rows (v5e), 256 rows (v6e/v7x).
    try:
        kind = jax.devices()[0].device_kind.lower()
    except Exception:
        return 256
    return 128 if "v5" in kind else 256


# ------------------------- parameter construction (numpy glue) -----------------
def custom_mel(sr, n_fft, n_mels):
    """Reproduces CustomLogmelFilterBank.mel (norm=1, hard-coded mel_f)."""
    n_bins = 1 + n_fft // 2
    weights = np.zeros((n_mels, n_bins))
    fftfreqs = np.linspace(0.0, float(sr) / 2, n_bins)          # librosa.fft_frequencies
    fdiff = np.diff(MEL_F)
    ramps = np.subtract.outer(MEL_F, fftfreqs)
    for i in range(n_mels):
        lower = -ramps[i] / fdiff[i]
        upper = ramps[i + 2] / fdiff[i + 1]
        weights[i] = np.maximum(0, np.minimum(lower, upper))
    enorm = 2.0 / (MEL_F[2:n_mels + 2] - MEL_F[:n_mels])
    weights *= enorm[:, np.newaxis]
    return weights                                              # (n_mels, n_bins)


def make_params(key):
    n_bins = 1 + N_FFT // 2
    n_sin = N_FFT // 2 - 1                   # sin is identically 0 for bins 0 and N/2
    ncols = n_bins + n_sin                   # == N_FFT for even n_fft -> no lane padding
    ncols_pad = _round_up(ncols, 128)
    mel_pad = _round_up(N_MELS, 128)

    n = np.arange(N_FFT)
    win = 0.5 - 0.5 * np.cos(2.0 * np.pi * n / N_FFT)           # periodic Hann
    ang = 2.0 * np.pi * np.outer(n, np.arange(n_bins)) / N_FFT
    cos_b = win[:, None] * np.cos(ang)                          # (n_fft, n_bins)
    sin_b = win[:, None] * np.sin(ang)
    melW = custom_mel(SR, N_FFT, N_MELS).T                      # (n_bins, n_mels)

    # Exact-width, window-folded DFT basis: one MXU matmul gives
    # z = frames @ [cos_0..cos_{N/2} | sin_1..sin_{N/2-1}], so z*z = [re^2 | im^2].
    basis = np.zeros((N_FFT, ncols_pad), np.float32)
    basis[:, :n_bins] = cos_b
    basis[:, n_bins:ncols] = sin_b[:, 1:n_bins - 1]

    # Stacked mel matrix so (z*z) @ melW2 == (re^2 + im^2) @ melW; mel lanes padded to 128.
    melw2 = np.zeros((ncols_pad, mel_pad), np.float32)
    melw2[:n_bins, :N_MELS] = melW
    melw2[n_bins:ncols, :N_MELS] = melW[1:n_bins - 1]

    # BatchNorm2d(n_mels) eval affine (default init: gamma=1, beta=0, mean=0, var=1),
    # folded into power_to_db:  out = (10*scale)*log10(max(mel, amin)) + bias'
    gamma = np.ones(N_MELS)
    beta = np.zeros(N_MELS)
    r_mean = np.zeros(N_MELS)
    r_var = np.ones(N_MELS)
    bn_scale = gamma / np.sqrt(r_var + BN_EPS)
    bn_bias = beta - r_mean * bn_scale
    scale10 = np.zeros((1, mel_pad), np.float32)
    scale10[0, :N_MELS] = 10.0 * bn_scale
    bias2 = np.zeros((1, mel_pad), np.float32)
    bias2[0, :N_MELS] = bn_bias - bn_scale * DB_OFFSET

    # fc: Linear(final_in_features=1, n_classes)  (identity backbone stand-in)
    kw, kb = jax.random.split(key)
    fc_w = 0.02 * jax.random.normal(kw, (1, N_CLASSES), jnp.float32)
    fc_b = 0.02 * jax.random.normal(kb, (1, N_CLASSES), jnp.float32)

    return dict(
        # kernel operands (bf16 weights for the MXU, f32 affine / head params)
        basis_bf16=jnp.asarray(basis).astype(jnp.bfloat16),
        melw2_bf16=jnp.asarray(melw2).astype(jnp.bfloat16),
        scale10=jnp.asarray(scale10),
        bias2=jnp.asarray(bias2),
        fc_w=fc_w, fc_b=fc_b,
        # full-precision copies for the pure-JAX reference
        cos_b=jnp.asarray(cos_b.astype(np.float32)),
        sin_b=jnp.asarray(sin_b.astype(np.float32)),
        melW=jnp.asarray(melW.astype(np.float32)),
        bn_scale=jnp.asarray(bn_scale.astype(np.float32)).reshape(1, N_MELS),
        bn_bias=jnp.asarray(bn_bias.astype(np.float32)).reshape(1, N_MELS),
    )


# ------------------------- fused Pallas kernel ---------------------------------
def _fused_kernel(inv_count, frames_ref, basis_ref, melw2_ref,
                  scale10_ref, bias2_ref, fcw_ref, fcb_ref,
                  out_ref, acc_ref):
    j = pl.program_id(1)

    @pl.when(j == 0)
    def _init():
        acc_ref[...] = jnp.zeros_like(acc_ref)

    frames = frames_ref[0]                                               # (tt, n_fft) bf16
    # Single MXU matmul against [cos | sin_nonzero]:  z = [re | im]
    z = jnp.dot(frames, basis_ref[...], preferred_element_type=jnp.float32)
    p = z * z                                                            # f32 power halves
    # (re^2 + im^2) @ melW via the stacked [melW; melW[1:N/2]] matrix, 128-lane dense.
    mel = jnp.dot(p.astype(jnp.bfloat16), melw2_ref[...],
                  preferred_element_type=jnp.float32)                    # (tt, 128)
    # power_to_db (top_db=None) + bn0 (eval) folded into one affine of log10.
    x = scale10_ref[...] * jnp.log10(jnp.maximum(mel, AMIN)) + bias2_ref[...]

    # GeM accumulation: sum of clamp(x, eps)^3 (explicit cube -> VPU).  Zero-padded
    # mel lanes / time rows contribute <= eps^3 = 1e-18 each, negligible because the
    # epilogue divides by the exact (n_mels * T) element count.
    y = jnp.maximum(x, GEM_EPS)
    acc_ref[...] += jnp.sum(y * y * y, axis=0, keepdims=True)            # (1, 128)

    @pl.when(j == pl.num_programs(1) - 1)
    def _finalize():
        total = jnp.sum(acc_ref[...], axis=-1, keepdims=True)            # (1, 1)
        pooled = (total * inv_count) ** (1.0 / GEM_P)                    # GeM ^ (1/p)
        feat = jnp.maximum(pooled, 0.0)                                  # ReLU; Dropout(eval)=id
        out_ref[0] = feat * fcw_ref[...] + fcb_ref[...]                  # Linear(1, n_classes)


def _weight_spec(shape, single_buffer):
    """Grid-invariant weight operand; optionally single-buffered (halves resident
    VMEM for the constants -- matters at production n_fft=2048 on v7x's 64 MiB)."""
    index_map = lambda b, j: (0,) * len(shape)
    if single_buffer:
        try:
            return pl.BlockSpec(shape, index_map, pipeline_mode=pl.Buffered(1))
        except Exception:   # pipeline_mode / Buffered(1) not supported by this version
            pass
    return pl.BlockSpec(shape, index_map)


def _fused_forward(frames_p, t_real, params, tt, single_buffer_weights):
    B, T_pad, n_fft = frames_p.shape
    basis = params["basis_bf16"]
    melw2 = params["melw2_bf16"]
    scale10 = params["scale10"]
    bias2 = params["bias2"]
    fc_w = params["fc_w"]
    fc_b = params["fc_b"]
    ncols = basis.shape[1]
    mel_pad = melw2.shape[1]
    n_cls = fc_w.shape[1]
    inv_count = 1.0 / float(N_MELS * t_real)

    kernel = functools.partial(_fused_kernel, inv_count)

    out = pl.pallas_call(
        kernel,
        out_shape=jax.ShapeDtypeStruct((B, 1, n_cls), jnp.float32),
        grid_spec=pltpu.PrefetchScalarGridSpec(
            num_scalar_prefetch=0,
            grid=(B, T_pad // tt),
            in_specs=[
                pl.BlockSpec((1, tt, n_fft), lambda b, j: (b, j, 0)),
                _weight_spec((n_fft, ncols), single_buffer_weights),
                _weight_spec((ncols, mel_pad), single_buffer_weights),
                pl.BlockSpec((1, mel_pad), lambda b, j: (0, 0)),
                pl.BlockSpec((1, mel_pad), lambda b, j: (0, 0)),
                pl.BlockSpec((1, n_cls), lambda b, j: (0, 0)),
                pl.BlockSpec((1, n_cls), lambda b, j: (0, 0)),
            ],
            out_specs=pl.BlockSpec((1, 1, n_cls), lambda b, j: (b, 0, 0)),
            scratch_shapes=[pltpu.VMEM((1, mel_pad), jnp.float32)],
        ),
        compiler_params=pltpu.CompilerParams(
            dimension_semantics=("parallel", "arbitrary"),
            vmem_limit_bytes=64 * 1024 * 1024,
        ),
    )(frames_p, basis, melw2, scale10, bias2, fc_w, fc_b)
    return out.reshape(B, n_cls)


# ------------------------- full forward (glue + kernel) ------------------------
def frame_signal(x_wave):
    """torchlibrosa Spectrogram framing: center=True, reflect pad, hop stride."""
    B, L = x_wave.shape
    pad = N_FFT // 2
    xp = jnp.pad(x_wave, ((0, 0), (pad, pad)), mode="reflect")
    T = 1 + L // HOP
    idx = np.arange(T)[:, None] * HOP + np.arange(N_FFT)[None, :]
    frames = xp[:, idx]                                         # (B, T, n_fft)
    return frames, T


def custom_model_forward(x_wave, params):
    frames, T = frame_signal(x_wave)                            # (B, T, n_fft) f32
    tt = min(_default_row_tile(), _round_up(T, 16))             # big row tile (bf16 sublane=16)
    T_pad = _round_up(T, tt)
    frames_p = jnp.pad(frames, ((0, 0), (0, T_pad - T), (0, 0))).astype(jnp.bfloat16)
    # TODO(synk): timm backbone omitted (no in-script definition) -> identity features;
    # GeM/ReLU/FC head is fused into the kernel epilogue.
    try:
        return jax.block_until_ready(_fused_forward(frames_p, T, params, tt, True))
    except Exception:
        # Fallback: default double-buffered weights (if pl.Buffered(1) is unsupported).
        return jax.block_until_ready(_fused_forward(frames_p, T, params, tt, False))


# ------------------------- pure-JAX reference (for a sanity check) -------------
def reference_forward(x_wave, params):
    B = x_wave.shape[0]
    frames, T = frame_signal(x_wave)
    hi = jax.lax.Precision.HIGHEST
    f2 = frames.reshape(B * T, N_FFT)
    re = jnp.dot(f2, params["cos_b"], precision=hi)
    im = jnp.dot(f2, params["sin_b"], precision=hi)
    power = re * re + im * im
    mel = jnp.dot(power, params["melW"], precision=hi)
    logmel = 10.0 * jnp.log10(jnp.maximum(mel, AMIN)) - DB_OFFSET
    bn = logmel * params["bn_scale"] + params["bn_bias"]
    x = jnp.swapaxes(bn.reshape(B, 1, T, N_MELS), 2, 3)         # (B, 1, mel, T)
    x2d = x.reshape(B, -1)
    pooled = jnp.mean(jnp.maximum(x2d, GEM_EPS) ** GEM_P, axis=-1, keepdims=True) ** (1.0 / GEM_P)
    feat = jnp.maximum(pooled, 0.0)
    return jnp.dot(feat, params["fc_w"], precision=hi) + params["fc_b"]


# ------------------------- main -----------------------------------------------
if __name__ == "__main__":
    key = jax.random.PRNGKey(0)
    k_x, k_p = jax.random.split(key)
    x = jax.random.normal(k_x, (BATCH, AUDIO_LEN), dtype=jnp.float32)
    params = make_params(k_p)

    logits = jax.block_until_ready(custom_model_forward(x, params))
    assert logits.shape == (BATCH, N_CLASSES)

    ref = jax.block_until_ready(reference_forward(x, params))
    np.testing.assert_allclose(np.asarray(logits), np.asarray(ref), rtol=2e-2, atol=2e-2)

    print("KERNEL_OK")
</pallas_src>

<mosaic_0001>
module attributes {stable_mosaic.version = 11 : i64} {
  func.func @_fused_kernel(%arg0: i32, %arg1: i32, %arg2: memref<1x32x256xbf16, #tpu.memory_space<vmem>>, %arg3: memref<256x256xbf16, #tpu.memory_space<vmem>>, %arg4: memref<256x128xbf16, #tpu.memory_space<vmem>>, %arg5: memref<1x128xf32, #tpu.memory_space<vmem>>, %arg6: memref<1x128xf32, #tpu.memory_space<vmem>>, %arg7: memref<1x24xf32, #tpu.memory_space<vmem>>, %arg8: memref<1x24xf32, #tpu.memory_space<vmem>>, %arg9: memref<1x1x24xf32, #tpu.memory_space<vmem>>, %arg10: memref<1x128xf32, #tpu.memory_space<vmem>>) attributes {dimension_semantics = [#tpu.dimension_semantics<parallel>, #tpu.dimension_semantics<arbitrary>], iteration_bounds = array<i64: 2, 1>, scalar_prefetch = 0 : i64, scratch_operands = 1 : i64, tpu.core_type = #tpu.core_type<tc>, window_params = [{transform_indices = @transform_0, window_bounds = array<i64: 1, 32, 256>}, {pipeline_mode = #tpu.pipeline_mode<synchronous>, transform_indices = @transform_1, window_bounds = array<i64: 256, 256>}, {pipeline_mode = #tpu.pipeline_mode<synchronous>, transform_indices = @transform_2, window_bounds = array<i64: 256, 128>}, {pipeline_mode = #tpu.pipeline_mode<synchronous>, transform_indices = @transform_3, window_bounds = array<i64: 1, 128>}, {pipeline_mode = #tpu.pipeline_mode<synchronous>, transform_indices = @transform_4, window_bounds = array<i64: 1, 128>}, {pipeline_mode = #tpu.pipeline_mode<synchronous>, transform_indices = @transform_5, window_bounds = array<i64: 1, 24>}, {pipeline_mode = #tpu.pipeline_mode<synchronous>, transform_indices = @transform_6, window_bounds = array<i64: 1, 24>}, {transform_indices = @transform_7, window_bounds = array<i64: 1, 1, 24>}]} {
    %c0_i32 = arith.constant 0 : i32
    %0 = arith.cmpi eq, %arg1, %c0_i32 : i32
    %1 = arith.extui %0 : i1 to i32
    %c0_i32_0 = arith.constant 0 : i32
    %2 = arith.cmpi ne, %1, %c0_i32_0 : i32
    scf.if %2 {
      %cst_22 = arith.constant 0.000000e+00 : f32
      %34 = vector.broadcast %cst_22 : f32 to vector<1x128xf32>
      %c0_23 = arith.constant 0 : index
      %c0_24 = arith.constant 0 : index
      %35 = vector.load %arg10[%c0_23, %c0_24] : memref<1x128xf32, #tpu.memory_space<vmem>>, vector<1x128xf32>
      tpu.vector_store %arg10[%c0_23, %c0_24], %34 {strides = array<i32>} : memref<1x128xf32, #tpu.memory_space<vmem>>, vector<1x128xf32>,
    } else {
    }
    %c0 = arith.constant 0 : index
    %c0_1 = arith.constant 0 : index
    %c0_2 = arith.constant 0 : index
    %3 = vector.load %arg2[%c0, %c0_1, %c0_2] : memref<1x32x256xbf16, #tpu.memory_space<vmem>>, vector<1x32x256xbf16>
    %4 = vector.shape_cast %3 : vector<1x32x256xbf16> to vector<32x256xbf16>
    %c0_3 = arith.constant 0 : index
    %c0_4 = arith.constant 0 : index
    %5 = vector.load %arg3[%c0_3, %c0_4] : memref<256x256xbf16, #tpu.memory_space<vmem>>, vector<256x256xbf16>
    %cst = arith.constant dense<0.000000e+00> : vector<32x256xf32>
    %6 = tpu.matmul %4, %5, %cst {dimension_numbers = #tpu.dot_dimension_numbers<[1], [0], [0], [1], [0, 0, 1, 1], [], []>} : vector<32x256xbf16>, vector<256x256xbf16>, vector<32x256xf32> -> vector<32x256xf32>
    %7 = arith.mulf %6, %6 : vector<32x256xf32>
    %8 = arith.truncf %7 : vector<32x256xf32> to vector<32x256xbf16>
    %c0_5 = arith.constant 0 : index
    %c0_6 = arith.constant 0 : index
    %9 = vector.load %arg4[%c0_5, %c0_6] : memref<256x128xbf16, #tpu.memory_space<vmem>>, vector<256x128xbf16>
    %cst_7 = arith.constant dense<0.000000e+00> : vector<32x128xf32>
    %10 = tpu.matmul %8, %9, %cst_7 {dimension_numbers = #tpu.dot_dimension_numbers<[1], [0], [0], [1], [0, 0, 1, 1], [], []>} : vector<32x256xbf16>, vector<256x128xbf16>, vector<32x128xf32> -> vector<32x128xf32>
    %c0_8 = arith.constant 0 : index
    %c0_9 = arith.constant 0 : index
    %11 = vector.load %arg5[%c0_8, %c0_9] : memref<1x128xf32, #tpu.memory_space<vmem>>, vector<1x128xf32>
    %cst_10 = arith.constant 1.000000e-10 : f32
    %12 = vector.broadcast %cst_10 : f32 to vector<32x128xf32>
    %13 = arith.maximumf %10, %12 : vector<32x128xf32>
    %14 = math.log %13 : vector<32x128xf32>
    %cst_11 = arith.constant 0.434294492 : f32
    %15 = vector.broadcast %cst_11 : f32 to vector<32x128xf32>
    %16 = arith.mulf %14, %15 : vector<32x128xf32>
    %17 = vector.broadcast %11 : vector<1x128xf32> to vector<32x128xf32>
    %18 = arith.mulf %17, %16 : vector<32x128xf32>
    %c0_12 = arith.constant 0 : index
    %c0_13 = arith.constant 0 : index
    %19 = vector.load %arg6[%c0_12, %c0_13] : memref<1x128xf32, #tpu.memory_space<vmem>>, vector<1x128xf32>
    %20 = vector.broadcast %19 : vector<1x128xf32> to vector<32x128xf32>
    %21 = arith.addf %18, %20 : vector<32x128xf32>
    %cst_14 = arith.constant 9.99999997E-7 : f32
    %22 = vector.broadcast %cst_14 : f32 to vector<32x128xf32>
    %23 = arith.maximumf %21, %22 : vector<32x128xf32>
    %c0_15 = arith.constant 0 : index
    %c0_16 = arith.constant 0 : index
    %24 = vector.load %arg10[%c0_15, %c0_16] : memref<1x128xf32, #tpu.memory_space<vmem>>, vector<1x128xf32>
    %25 = arith.mulf %23, %23 : vector<32x128xf32>
    %26 = arith.mulf %25, %23 : vector<32x128xf32>
    %cst_17 = arith.constant dense<0.000000e+00> : vector<128xf32>
    %27 = vector.multi_reduction <add>, %26, %cst_17 [0] : vector<32x128xf32> to vector<128xf32>
    %28 = vector.shape_cast %27 : vector<128xf32> to vector<1x128xf32>
    %29 = arith.addf %24, %28 : vector<1x128xf32>
    %c0_18 = arith.constant 0 : index
    %c0_19 = arith.constant 0 : index
    %30 = vector.load %arg10[%c0_18, %c0_19] : memref<1x128xf32, #tpu.memory_space<vmem>>, vector<1x128xf32>
    tpu.vector_store %arg10[%c0_18, %c0_19], %29 {strides = array<i32>} : memref<1x128xf32, #tpu.memory_space<vmem>>, vector<1x128xf32>,
    %c0_i32_20 = arith.constant 0 : i32
    %31 = arith.cmpi eq, %arg1, %c0_i32_20 : i32
    %32 = arith.extui %31 : i1 to i32
    %c0_i32_21 = arith.constant 0 : i32
    %33 = arith.cmpi ne, %32, %c0_i32_21 : i32
    scf.if %33 {
      %c0_22 = arith.constant 0 : index
      %c0_23 = arith.constant 0 : index
      %34 = vector.load %arg10[%c0_22, %c0_23] : memref<1x128xf32, #tpu.memory_space<vmem>>, vector<1x128xf32>
      %cst_24 = arith.constant dense<0.000000e+00> : vector<1xf32>
      %35 = vector.multi_reduction <add>, %34, %cst_24 [1] : vector<1x128xf32> to vector<1xf32>
      %36 = vector.shape_cast %35 : vector<1xf32> to vector<1x1xf32>
      %cst_25 = arith.constant 9.1911765E-4 : f32
      %37 = vector.broadcast %cst_25 : f32 to vector<1x1xf32>
      %38 = arith.mulf %36, %37 : vector<1x1xf32>
      %cst_26 = arith.constant 0.333333343 : f32
      %39 = vector.broadcast %cst_26 : f32 to vector<1x1xf32>
      %40 = math.powf %38, %39 : vector<1x1xf32>
      %cst_27 = arith.constant 0.000000e+00 : f32
      %41 = vector.broadcast %cst_27 : f32 to vector<1x1xf32>
      %42 = arith.maximumf %40, %41 : vector<1x1xf32>
      %c0_28 = arith.constant 0 : index
      %c0_29 = arith.constant 0 : index
      %43 = vector.load %arg7[%c0_28, %c0_29] : memref<1x24xf32, #tpu.memory_space<vmem>>, vector<1x24xf32>
      %44 = vector.broadcast %42 : vector<1x1xf32> to vector<1x24xf32>
      %45 = arith.mulf %44, %43 : vector<1x24xf32>
      %c0_30 = arith.constant 0 : index
      %c0_31 = arith.constant 0 : index
      %46 = vector.load %arg8[%c0_30, %c0_31] : memref<1x24xf32, #tpu.memory_space<vmem>>, vector<1x24xf32>
      %47 = arith.addf %45, %46 : vector<1x24xf32>
      %c0_32 = arith.constant 0 : index
      %c0_33 = arith.constant 0 : index
      %c0_34 = arith.constant 0 : index
      %48 = vector.load %arg9[%c0_32, %c0_33, %c0_34] : memref<1x1x24xf32, #tpu.memory_space<vmem>>, vector<1x1x24xf32>
      %49 = vector.shape_cast %48 : vector<1x1x24xf32> to vector<1x24xf32>
      %50 = vector.shape_cast %47 : vector<1x24xf32> to vector<1x1x24xf32>
      tpu.vector_store %arg9[%c0_32, %c0_33, %c0_34], %50 {strides = array<i32>} : memref<1x1x24xf32, #tpu.memory_space<vmem>>, vector<1x1x24xf32>,
    } else {
    }
    return
  }
  func.func @transform_0(%arg0: i32, %arg1: i32) -> (i32, i32, i32) {
    %c0_i32 = arith.constant 0 : i32
    %c0_i32_0 = arith.constant 0 : i32
    return %arg0, %arg1, %c0_i32 : i32, i32, i32
  }
  func.func @transform_1(%arg0: i32, %arg1: i32) -> (i32, i32) {
    %c0_i32 = arith.constant 0 : i32
    %c0_i32_0 = arith.constant 0 : i32
    %c0_i32_1 = arith.constant 0 : i32
    return %c0_i32, %c0_i32_0 : i32, i32
  }
  func.func @transform_2(%arg0: i32, %arg1: i32) -> (i32, i32) {
    %c0_i32 = arith.constant 0 : i32
    %c0_i32_0 = arith.constant 0 : i32
    %c0_i32_1 = arith.constant 0 : i32
    return %c0_i32, %c0_i32_0 : i32, i32
  }
  func.func @transform_3(%arg0: i32, %arg1: i32) -> (i32, i32) {
    %c0_i32 = arith.constant 0 : i32
    %c0_i32_0 = arith.constant 0 : i32
    %c0_i32_1 = arith.constant 0 : i32
    return %c0_i32, %c0_i32_0 : i32, i32
  }
  func.func @transform_4(%arg0: i32, %arg1: i32) -> (i32, i32) {
    %c0_i32 = arith.constant 0 : i32
    %c0_i32_0 = arith.constant 0 : i32
    %c0_i32_1 = arith.constant 0 : i32
    return %c0_i32, %c0_i32_0 : i32, i32
  }
  func.func @transform_5(%arg0: i32, %arg1: i32) -> (i32, i32) {
    %c0_i32 = arith.constant 0 : i32
    %c0_i32_0 = arith.constant 0 : i32
    %c0_i32_1 = arith.constant 0 : i32
    return %c0_i32, %c0_i32_0 : i32, i32
  }
  func.func @transform_6(%arg0: i32, %arg1: i32) -> (i32, i32) {
    %c0_i32 = arith.constant 0 : i32
    %c0_i32_0 = arith.constant 0 : i32
    %c0_i32_1 = arith.constant 0 : i32
    return %c0_i32, %c0_i32_0 : i32, i32
  }
  func.func @transform_7(%arg0: i32, %arg1: i32) -> (i32, i32, i32) {
    %c0_i32 = arith.constant 0 : i32
    %c0_i32_0 = arith.constant 0 : i32
    %c0_i32_1 = arith.constant 0 : i32
    return %arg0, %c0_i32, %c0_i32_0 : i32, i32, i32
  }
}

module attributes {stable_mosaic.version = 11 : i64} {
  func.func @_fused_kernel(%arg0: i32, %arg1: i32, %arg2: memref<1x32x256xbf16, #tpu.memory_space<vmem>>, %arg3: memref<256x256xbf16, #tpu.memory_space<vmem>>, %arg4: memref<256x128xbf16, #tpu.memory_space<vmem>>, %arg5: memref<1x128xf32, #tpu.memory_space<vmem>>, %arg6: memref<1x128xf32, #tpu.memory_space<vmem>>, %arg7: memref<1x24xf32, #tpu.memory_space<vmem>>, %arg8: memref<1x24xf32, #tpu.memory_space<vmem>>, %arg9: memref<1x1x24xf32, #tpu.memory_space<vmem>>, %arg10: memref<1x128xf32, #tpu.memory_space<vmem>>) attributes {dimension_semantics = [#tpu.dimension_semantics<parallel>, #tpu.dimension_semantics<arbitrary>], iteration_bounds = array<i64: 2, 1>, scalar_prefetch = 0 : i64, scratch_operands = 1 : i64, tpu.core_type = #tpu.core_type<tc>, window_params = [{transform_indices = @transform_0, window_bounds = array<i64: 1, 32, 256>}, {pipeline_mode = #tpu.pipeline_mode<synchronous>, transform_indices = @transform_1, window_bounds = array<i64: 256, 256>}, {pipeline_mode = #tpu.pipeline_mode<synchronous>, transform_indices = @transform_2, window_bounds = array<i64: 256, 128>}, {pipeline_mode = #tpu.pipeline_mode<synchronous>, transform_indices = @transform_3, window_bounds = array<i64: 1, 128>}, {pipeline_mode = #tpu.pipeline_mode<synchronous>, transform_indices = @transform_4, window_bounds = array<i64: 1, 128>}, {pipeline_mode = #tpu.pipeline_mode<synchronous>, transform_indices = @transform_5, window_bounds = array<i64: 1, 24>}, {pipeline_mode = #tpu.pipeline_mode<synchronous>, transform_indices = @transform_6, window_bounds = array<i64: 1, 24>}, {transform_indices = @transform_7, window_bounds = array<i64: 1, 1, 24>}]} {
    %c0_i32 = arith.constant 0 : i32
    %0 = arith.cmpi eq, %arg1, %c0_i32 : i32
    %1 = arith.extui %0 : i1 to i32
    %c0_i32_0 = arith.constant 0 : i32
    %2 = arith.cmpi ne, %1, %c0_i32_0 : i32
    scf.if %2 {
      %cst_22 = arith.constant 0.000000e+00 : f32
      %34 = vector.broadcast %cst_22 : f32 to vector<1x128xf32>
      %c0_23 = arith.constant 0 : index
      %c0_24 = arith.constant 0 : index
      %35 = vector.load %arg10[%c0_23, %c0_24] : memref<1x128xf32, #tpu.memory_space<vmem>>, vector<1x128xf32>
      tpu.vector_store %arg10[%c0_23, %c0_24], %34 {strides = array<i32>} : memref<1x128xf32, #tpu.memory_space<vmem>>, vector<1x128xf32>,
    } else {
    }
    %c0 = arith.constant 0 : index
    %c0_1 = arith.constant 0 : index
    %c0_2 = arith.constant 0 : index
    %3 = vector.load %arg2[%c0, %c0_1, %c0_2] : memref<1x32x256xbf16, #tpu.memory_space<vmem>>, vector<1x32x256xbf16>
    %4 = vector.shape_cast %3 : vector<1x32x256xbf16> to vector<32x256xbf16>
    %c0_3 = arith.constant 0 : index
    %c0_4 = arith.constant 0 : index
    %5 = vector.load %arg3[%c0_3, %c0_4] : memref<256x256xbf16, #tpu.memory_space<vmem>>, vector<256x256xbf16>
    %cst = arith.constant dense<0.000000e+00> : vector<32x256xf32>
    %6 = tpu.matmul %4, %5, %cst {dimension_numbers = #tpu.dot_dimension_numbers<[1], [0], [0], [1], [0, 0, 1, 1], [], []>} : vector<32x256xbf16>, vector<256x256xbf16>, vector<32x256xf32> -> vector<32x256xf32>
    %7 = arith.mulf %6, %6 : vector<32x256xf32>
    %8 = arith.truncf %7 : vector<32x256xf32> to vector<32x256xbf16>
    %c0_5 = arith.constant 0 : index
    %c0_6 = arith.constant 0 : index
    %9 = vector.load %arg4[%c0_5, %c0_6] : memref<256x128xbf16, #tpu.memory_space<vmem>>, vector<256x128xbf16>
    %cst_7 = arith.constant dense<0.000000e+00> : vector<32x128xf32>
    %10 = tpu.matmul %8, %9, %cst_7 {dimension_numbers = #tpu.dot_dimension_numbers<[1], [0], [0], [1], [0, 0, 1, 1], [], []>} : vector<32x256xbf16>, vector<256x128xbf16>, vector<32x128xf32> -> vector<32x128xf32>
    %c0_8 = arith.constant 0 : index
    %c0_9 = arith.constant 0 : index
    %11 = vector.load %arg5[%c0_8, %c0_9] : memref<1x128xf32, #tpu.memory_space<vmem>>, vector<1x128xf32>
    %cst_10 = arith.constant 1.000000e-10 : f32
    %12 = vector.broadcast %cst_10 : f32 to vector<32x128xf32>
    %13 = arith.maximumf %10, %12 : vector<32x128xf32>
    %14 = math.log %13 : vector<32x128xf32>
    %cst_11 = arith.constant 0.434294492 : f32
    %15 = vector.broadcast %cst_11 : f32 to vector<32x128xf32>
    %16 = arith.mulf %14, %15 : vector<32x128xf32>
    %17 = vector.broadcast %11 : vector<1x128xf32> to vector<32x128xf32>
    %18 = arith.mulf %17, %16 : vector<32x128xf32>
    %c0_12 = arith.constant 0 : index
    %c0_13 = arith.constant 0 : index
    %19 = vector.load %arg6[%c0_12, %c0_13] : memref<1x128xf32, #tpu.memory_space<vmem>>, vector<1x128xf32>
    %20 = vector.broadcast %19 : vector<1x128xf32> to vector<32x128xf32>
    %21 = arith.addf %18, %20 : vector<32x128xf32>
    %cst_14 = arith.constant 9.99999997E-7 : f32
    %22 = vector.broadcast %cst_14 : f32 to vector<32x128xf32>
    %23 = arith.maximumf %21, %22 : vector<32x128xf32>
    %c0_15 = arith.constant 0 : index
    %c0_16 = arith.constant 0 : index
    %24 = vector.load %arg10[%c0_15, %c0_16] : memref<1x128xf32, #tpu.memory_space<vmem>>, vector<1x128xf32>
    %25 = arith.mulf %23, %23 : vector<32x128xf32>
    %26 = arith.mulf %25, %23 : vector<32x128xf32>
    %cst_17 = arith.constant dense<0.000000e+00> : vector<128xf32>
    %27 = vector.multi_reduction <add>, %26, %cst_17 [0] : vector<32x128xf32> to vector<128xf32>
    %28 = vector.shape_cast %27 : vector<128xf32> to vector<1x128xf32>
    %29 = arith.addf %24, %28 : vector<1x128xf32>
    %c0_18 = arith.constant 0 : index
    %c0_19 = arith.constant 0 : index
    %30 = vector.load %arg10[%c0_18, %c0_19] : memref<1x128xf32, #tpu.memory_space<vmem>>, vector<1x128xf32>
    tpu.vector_store %arg10[%c0_18, %c0_19], %29 {strides = array<i32>} : memref<1x128xf32, #tpu.memory_space<vmem>>, vector<1x128xf32>,
    %c0_i32_20 = arith.constant 0 : i32
    %31 = arith.cmpi eq, %arg1, %c0_i32_20 : i32
    %32 = arith.extui %31 : i1 to i32
    %c0_i32_21 = arith.constant 0 : i32
    %33 = arith.cmpi ne, %32, %c0_i32_21 : i32
    scf.if %33 {
      %c0_22 = arith.constant 0 : index
      %c0_23 = arith.constant 0 : index
      %34 = vector.load %arg10[%c0_22, %c0_23] : memref<1x128xf32, #tpu.memory_space<vmem>>, vector<1x128xf32>
      %cst_24 = arith.constant dense<0.000000e+00> : vector<1xf32>
      %35 = vector.multi_reduction <add>, %34, %cst_24 [1] : vector<1x128xf32> to vector<1xf32>
      %36 = vector.shape_cast %35 : vector<1xf32> to vector<1x1xf32>
      %cst_25 = arith.constant 9.1911765E-4 : f32
      %37 = vector.broadcast %cst_25 : f32 to vector<1x1xf32>
      %38 = arith.mulf %36, %37 : vector<1x1xf32>
      %cst_26 = arith.constant 0.333333343 : f32
      %39 = vector.broadcast %cst_26 : f32 to vector<1x1xf32>
      %40 = math.powf %38, %39 : vector<1x1xf32>
      %cst_27 = arith.constant 0.000000e+00 : f32
      %41 = vector.broadcast %cst_27 : f32 to vector<1x1xf32>
      %42 = arith.maximumf %40, %41 : vector<1x1xf32>
      %c0_28 = arith.constant 0 : index
      %c0_29 = arith.constant 0 : index
      %43 = vector.load %arg7[%c0_28, %c0_29] : memref<1x24xf32, #tpu.memory_space<vmem>>, vector<1x24xf32>
      %44 = vector.broadcast %42 : vector<1x1xf32> to vector<1x24xf32>
      %45 = arith.mulf %44, %43 : vector<1x24xf32>
      %c0_30 = arith.constant 0 : index
      %c0_31 = arith.constant 0 : index
      %46 = vector.load %arg8[%c0_30, %c0_31] : memref<1x24xf32, #tpu.memory_space<vmem>>, vector<1x24xf32>
      %47 = arith.addf %45, %46 : vector<1x24xf32>
      %c0_32 = arith.constant 0 : index
      %c0_33 = arith.constant 0 : index
      %c0_34 = arith.constant 0 : index
      %48 = vector.load %arg9[%c0_32, %c0_33, %c0_34] : memref<1x1x24xf32, #tpu.memory_space<vmem>>, vector<1x1x24xf32>
      %49 = vector.shape_cast %48 : vector<1x1x24xf32> to vector<1x24xf32>
      %50 = vector.shape_cast %47 : vector<1x24xf32> to vector<1x1x24xf32>
      tpu.vector_store %arg9[%c0_32, %c0_33, %c0_34], %50 {strides = array<i32>} : memref<1x1x24xf32, #tpu.memory_space<vmem>>, vector<1x1x24xf32>,
    } else {
    }
    return
  }
  func.func @transform_0(%arg0: i32, %arg1: i32) -> (i32, i32, i32) {
    %c0_i32 = arith.constant 0 : i32
    %c0_i32_0 = arith.constant 0 : i32
    return %arg0, %arg1, %c0_i32 : i32, i32, i32
  }
  func.func @transform_1(%arg0: i32, %arg1: i32) -> (i32, i32) {
    %c0_i32 = arith.constant 0 : i32
    %c0_i32_0 = arith.constant 0 : i32
    %c0_i32_1 = arith.constant 0 : i32
    return %c0_i32, %c0_i32_0 : i32, i32
  }
  func.func @transform_2(%arg0: i32, %arg1: i32) -> (i32, i32) {
    %c0_i32 = arith.constant 0 : i32
    %c0_i32_0 = arith.constant 0 : i32
    %c0_i32_1 = arith.constant 0 : i32
    return %c0_i32, %c0_i32_0 : i32, i32
  }
  func.func @transform_3(%arg0: i32, %arg1: i32) -> (i32, i32) {
    %c0_i32 = arith.constant 0 : i32
    %c0_i32_0 = arith.constant 0 : i32
    %c0_i32_1 = arith.constant 0 : i32
    return %c0_i32, %c0_i32_0 : i32, i32
  }
  func.func @transform_4(%arg0: i32, %arg1: i32) -> (i32, i32) {
    %c0_i32 = arith.constant 0 : i32
    %c0_i32_0 = arith.constant 0 : i32
    %c0_i32_1 = arith.constant 0 : i32
    return %c0_i32, %c0_i32_0 : i32, i32
  }
  func.func @transform_5(%arg0: i32, %arg1: i32) -> (i32, i32) {
    %c0_i32 = arith.constant 0 : i32
    %c0_i32_0 = arith.constant 0 : i32
    %c0_i32_1 = arith.constant 0 : i32
    return %c0_i32, %c0_i32_0 : i32, i32
  }
  func.func @transform_6(%arg0: i32, %arg1: i32) -> (i32, i32) {
    %c0_i32 = arith.constant 0 : i32
    %c0_i32_0 = arith.constant 0 : i32
    %c0_i32_1 = arith.constant 0 : i32
    return %c0_i32, %c0_i32_0 : i32, i32
  }
  func.func @transform_7(%arg0: i32, %arg1: i32) -> (i32, i32, i32) {
    %c0_i32 = arith.constant 0 : i32
    %c0_i32_0 = arith.constant 0 : i32
    %c0_i32_1 = arith.constant 0 : i32
    return %arg0, %c0_i32, %c0_i32_0 : i32, i32, i32
  }
}

</mosaic_0001>

<bundles_post_ra>
// kernel: tpu_custom_call.1
= control target key start
LH: loop header
LB: loop body
LE: loop exit
PB: predicated region body
PF: predicated region fallthrough
CT: control target
= control target key end

     0   :  { %s1696_s0 = inlined_call_operand.hbm [shape: bf16[2,32,256], index: 0, kind: input, shape index: {}]   ;;  %s1697_s1 = inlined_call_operand.hbm [shape: bf16[256,256], index: 1, kind: input, shape index: {}]   ;;  %s1698_s2 = inlined_call_operand.hbm [shape: bf16[256,128], index: 2, kind: input, shape index: {}]   ;;  %s1699_s3 = inlined_call_operand.vmem [shape: f32[1,128], index: 3, kind: input, shape index: {}]   ;;  %s1700_s4 = inlined_call_operand.vmem [shape: f32[1,128], index: 4, kind: input, shape index: {}]   ;;  %s1701_s5 = inlined_call_operand.vmem [shape: f32[1,24], index: 5, kind: input, shape index: {}]   ;;  %s1702_s6 = inlined_call_operand.vmem [shape: f32[1,24], index: 6, kind: input, shape index: {}]   ;;  %s1703_s7 = inlined_call_operand.hbm [shape: f32[2,1,24], index: 7, kind: output, shape index: {}]  }
   0x1   :  { %1707 = sst [smem:[#allocation14_spill]] %s1697_s1 }
   0x2   :  { %1708 = sst [smem:[#allocation15_spill]] %s1698_s2 }
   0x3   :  { %12 = vsyncpa [#allocation4], 0 }
   0x4   :  { %14 = vsyncpa [#allocation4 + $0x1], 0 }
   0x5   :  { %15 = vsyncpa [#allocation7], 0 }
   0x6   :  { %16 = vsyncpa [#allocation5], 0 }
   0x7   :  { %18 = vsyncpa [#allocation5 + $0x1], 0  ;;  %s1497_s24 = smov 0   ;;  %s1499_s25 = smov 0  }
   0x8   :  { %s1501_s26 = smov 0   ;;  %s1503_s27 = smov 0  }
   0x9   :  { %s1505_s28 = smov 0   ;;  %s1507_s29 = smov 0  }
   0xa LB: > { %s995_s30 = sadd.s32 4294967295, %s1446_s29   ;;  %s996_s8 = sadd.s32 4294967294, %s1446_s29   ;;  %s1446_s29 = sphi %s1507_s29, %s24_s29   ;;  %s1442_s28 = sphi %s1505_s28, %s1729_s28   ;;  %s1438_s27 = sphi %s1503_s27, %s1728_s27   ;;  %s1434_s26 = sphi %s1501_s26, %s1727_s26   ;;  %s1430_s25 = sphi %s1499_s25, %s1726_s25   ;;  %s1426_s24 = sphi %s1497_s24, %s1725_s24  }
   0xb   : > { %p58_p0 = scmp.ne.s32.totalorder %s1430_s25, %s1426_s24  ;;  %p1531_p1 = scmp.eq.s32.totalorder %s995_s30, 0 }
   0xc   : > { %p1535_p2 = scmp.eq.s32.totalorder %s995_s30, 1  ;;  %p214_p3 = scmp.eq.s32.totalorder %s996_s8, 1 }
   0xd   : > { %p1541_p4 = por %p1531_p1, %p58_p0  ;;  %p997_p5 = scmp.ge.s32.totalorder %s1446_s29, 1 }
   0xe   : > { %p1546_p6 = por %p214_p3, %p58_p0  ;;  %p221_p7 = scmp.lt.s32.totalorder %s1446_s29, 3 }
   0xf   : > { %s1448_s14 = smov [#allocation6]   ;;  %s1449_s17 = smov [#allocation8]  }
  0x10   : > { %s1712_s12 = scalar_select %p1546_p6, 1, 0 }
  0x11   : > { %p1551_p8 = pnand %p997_p5, %p221_p7  ;;  %s233_s15 = sshll.u32 %s1448_s14, 4  ;;  %s234_s15 = int_to_ptr.vmem [resolvable:$true] %s233_s15 }
  0x12   : > { %s246_s18 = sshll.u32 %s1449_s17, 4  ;;  %s1293_s19 = scalar_lea.vmem %s234_s15, 4096  ;;  %s247_s18 = int_to_ptr.vmem [resolvable:$true] %s246_s18 }
  0x13   : > { %p1124_p9 = pneg %p1551_p8  ;;  %p1294_p13 = scmp.ne.s32.totalorder %s234_s15, %s1293_s19 }
  0x14   : > { %p1301_p5 = scmp.lt.s32.totalorder %s234_s15, %s234_s15  ;;  %p1302_p7 = scmp.lt.s32.totalorder %s1293_s19, %s1293_s19 }
  0x15   : > { %p1560_p11 = pnand %p1124_p9, %p1531_p1 }
  0x16   : > { %p1303_p10 = por %p1302_p7, %p1301_p5 }
  0x17   : > { %p1284_p12 = pneg %p1560_p11 }
  0x19   : > { %p1296_p0 = pnand %p1294_p13, %p1284_p12 }
  0x1b   : > { %p1297_p3 = pneg %p1296_p0 }
  0x1d   : > { %p1304_p9 = pnand %p1303_p10, %p1297_p3 }
  0x1f   : > { %1307 = shalt.err (!%p1304_p9)
}
  0x20   : > { %s1704_s20 = smov 128   ;;  %s1705_s21 = smov 8  }
  0x21   : > { %s1715_s1 = sld [smem:[#allocation14_spill]]  ;;  %s1319_s30 = scalar_lea.vmem %s247_s18, 2048 }
  0x22   : > { %p1320_p13 = scmp.ne.s32.totalorder %s247_s18, %s1319_s30  ;;  %p1327_p10 = scmp.lt.s32.totalorder %s247_s18, %s247_s18 }
  0x23   : > { %p1328_p3 = scmp.lt.s32.totalorder %s1319_s30, %s1319_s30 }
  0x24   : > { %p1322_p0 = pnand %p1320_p13, %p1284_p12 }
  0x25   : > { %p1329_p7 = por %p1328_p3, %p1327_p10 }
  0x26   : > { %p1323_p5 = pneg %p1322_p0 }
  0x27   : > { %1127 = dma.hbm_to_vmem [thread:$0]  (!%p1560_p11), %s1715_s1, 4096, %s234_s15, [#allocation7], %s1704_s20, %s1704_s20, %s1705_s21  }
  0x28   : > { %p1330_p9 = pnand %p1329_p7, %p1323_p5 }
  0x2a   : > { %1333 = shalt.err (!%p1330_p9)
}
  0x2b   : > { %s1452_s8 = smov 64   ;;  %s1453_s14 = smov 4  }
  0x2c   : > { %s1716_s2 = sld [smem:[#allocation15_spill]]  ;;  %s36_s19 = sadd.s32 1, %s1442_s28 }
  0x2d   : > { %s45_s22 = sadd.s32 1, %s1434_s26  ;;  %p38_p12 = scmp.ge.s32.totalorder %s36_s19, 2 }
  0x2e   : > { %p52_p13 = scmp.ne.s32.totalorder %s1434_s26, %s1430_s25  ;;  %p53_p0 = scmp.eq.s32.totalorder %s1446_s29, 0 }
  0x2f   : > { %p1141_p5 = scmp.lt.s32.totalorder %s1446_s29, 2  ;;  %s1731_s19 = smov (%p38_p12, %s36_s19), 0 }
  0x30   : > { %1717 = sst [smem:[#allocation13_spill]] %s1731_s19  ;;  %p54_p10 = por %p53_p0, %p52_p13 }
  0x31   : > { %p1595_p3 = por %p1535_p2, %p52_p13  ;;  %s40_s16 = ssub.s32 %s1442_s28, %s1731_s19 }
  0x32   : > { %1130 = dma.hbm_to_vmem [thread:$0]  (!%p1560_p11), %s1716_s2, 2048, %s247_s18, [#allocation7], %s1452_s8, %s1452_s8, %s1453_s14  }
  0x33   : > { %s272_s30 = sand.u32 1, %s1434_s26   ;;  %p43_p7 = scmp.eq.s32.totalorder %s40_s16, 0 }
  0x34   : > { %s1001_s18 = sshll.u32 %s272_s30, 5  ;;  %s1065_s8 = sshll.u32 %s1442_s28, 9 }
  0x35   : > { %s1604_s14 = scalar_select %p43_p7, %s1434_s26, %s45_s22  }
  0x36   : > { %s285_s20 = scalar_lea.hbm %s1696_s0, %s1065_s8  ;;  %s276_s21 = scalar_lea.vmem [#allocation3], %s1001_s18 }
  0x37   : > { %s286_s1 = sshll.u32 %s276_s21, 4  ;;  %p1611_p11 = pnand %p1141_p5, %p54_p10  ;;  %s287_s1 = int_to_ptr.vmem [resolvable:$true] %s286_s1 }
  0x38   : > { %s273_s2 = scalar_lea.sflag [#allocation4], %s272_s30  ;;  %s1347_s16 = scalar_lea.vmem %s287_s1, 512 }
  0x39   : > { %p1336_p2 = pneg %p1611_p11  ;;  %p1348_p9 = scmp.ne.s32.totalorder %s287_s1, %s1347_s16 }
  0x3a   : > { %s1454_s22 = smov [#allocation3]  }
  0x3b   : > { %p1350_p12 = pnand %p1348_p9, %p1336_p2  ;;  %s1352_s19 = sshll.u32 %s1454_s22, 4  ;;  %s1353_s19 = int_to_ptr.vmem [resolvable:$false] %s1352_s19 }
  0x3c   : > { %s1354_s8 = scalar_lea.vmem %s1353_s19, 1024  ;;  %p1355_p0 = scmp.lt.s32.totalorder %s287_s1, %s1353_s19 }
  0x3d   : > { %p1351_p13 = pneg %p1350_p12  ;;  %p1356_p7 = scmp.lt.s32.totalorder %s1354_s8, %s1347_s16 }
  0x3f   : > { %p1357_p6 = por %p1356_p7, %p1355_p0 }
  0x41   : > { %p1358_p5 = pnand %p1357_p6, %p1351_p13 }
  0x43   : > { %1361 = shalt.err (!%p1358_p5)
}
  0x44   : > { %s1720_s21 = smov 8   ;;  %s1721_s18 = smov 128  }
  0x45   : > { %1134 = dma.hbm_to_vmem [thread:$0]  (!%p1611_p11), %s285_s20, 512, %s287_s1, %s273_s2, %s1721_s18, %s1721_s18, %s1720_s21  }
  0x46   : > { %298 = sbr.rel (%p1551_p8) target bundleno = 809 (0x329), region = 48  ;;  %s1625_s30 = sand.u32 (!%p1551_p8), 1, %s1430_s25  }
  0x47   : > { %s1005_s19 = sshll.u32 (!%p1551_p8), %s1625_s30, 5  ;;  %s301_s15 = scalar_lea.sflag (!%p1551_p8), [#allocation4], %s1625_s30 }
  0x48   : > { %s1629_s17 = scalar_lea.vmem (!%p1551_p8), [#allocation3], %s1005_s19 }
  0x4b   : > { %1413 = dma.done.wait (%p1541_p4), %s301_s15, 512  }
  0x4c   : > { %1415 = vsyncadd (%p1541_p4), %s301_s15, 4294966784 }
  0x4d   : > { %1417 = dma.done.wait (%p1531_p1), [#allocation7], 6144  }
  0x4e   : > { %1419 = vsyncadd (%p1531_p1), [#allocation7], 4294961152  ;;  %v1200_v0 = vld [vmem:[#allocation6 + $0x74] ss:$8 sps:$4 sm:$0xff]   ;;  %v1202_v1 = vld [vmem:[#allocation6 + $0x70] ss:$8 sps:$4 sm:$0xff]  }
  0x4f   : > { %565 = vmatprep.subr.bf16.mxu0 %v1200_v0  ;;  %v1203_v2 = vld [vmem:[#allocation6 + $0x64] ss:$8 sps:$4 sm:$0xff]   ;;  %v1205_v3 = vld [vmem:[#allocation6 + $0x60] ss:$8 sps:$4 sm:$0xff]   ;;  %v1206_v4 = vld [vmem:[#allocation6 + $0x54] ss:$8 sps:$4 sm:$0xff]  }
  0x50   : > { %566 = vmatpush1.bf16.msra.mxu0 %v1202_v1  ;;  %v1208_v5 = vld [vmem:[#allocation6 + $0x50] ss:$8 sps:$4 sm:$0xff]   ;;  %v1209_v6 = vld [vmem:[#allocation6 + $0x44] ss:$8 sps:$4 sm:$0xff]   ;;  %v1211_v7 = vld [vmem:[#allocation6 + $0x40] ss:$8 sps:$4 sm:$0xff]  }
  0x51   : > { %567 = vmatprep.subr.bf16.mxu0 %v1203_v2  ;;  %v1212_v8 = vld [vmem:[#allocation6 + $0x34] ss:$8 sps:$4 sm:$0xff]   ;;  %v1214_v9 = vld [vmem:[#allocation6 + $0x30] ss:$8 sps:$4 sm:$0xff]   ;;  %v1215_v10 = vld [vmem:[#allocation6 + $0x24] ss:$8 sps:$4 sm:$0xff]  }
  0x52   : > { %v1217_v11 = vld [vmem:[#allocation6 + $0x20] ss:$8 sps:$4 sm:$0xff]   ;;  %v1218_v12 = vld [vmem:[#allocation6 + $0x14] ss:$8 sps:$4 sm:$0xff]   ;;  %v1250_v13 = vld [vmem:[%s1629_s17 + $0x4] ss:$8 sps:$4 sm:$0xff]  }
  0x53   : > { %v1220_v14 = vld [vmem:[#allocation6 + $0x10] ss:$8 sps:$4 sm:$0xff]   ;;  %v1221_v15 = vld [vmem:[#allocation6 + $0x4] ss:$8 sps:$4 sm:$0xff]   ;;  %597 = vmatprep.mubr.bf16.mxu0 %v1250_v13  ;;  %v1223_v17 = vld [vmem:[#allocation6] ss:$8 sps:$4 sm:$0xff]  }
  0x54   : > { %568 = vmatpush1.bf16.msra.mxu0 %v1205_v3  ;;  %v1254_v16 = vld [vmem:[#allocation8 + $0x78] sm:$0xff]   ;;  %v1256_v20 = vld [vmem:[#allocation8 + $0x70] sm:$0xff]   ;;  %v1258_v22 = vld [vmem:[#allocation8 + $0x68] sm:$0xff]   ;;  %vm873_vm0 = vcmask 1040384   ;;  %s1062_s22 = sshll.u32 %s1438_s27, 4  ;;  %s341_s8 = scalar_lea.vmem [#allocation9], %s1625_s30 }
  0x55   : > { %569 = vmatprep.subr.bf16.mxu0 %v1206_v4  ;;  %v1255_v18 = vld [vmem:[#allocation8 + $0x38] sm:$0xff]   ;;  %1066 = vmatprep.subr.bf16.mxu1 %v1254_v16  ;;  %v1257_v21 = vld [vmem:[#allocation8 + $0x30] sm:$0xff]   ;;  %v1227_v24 = vld [vmem:[#allocation6 + $0xe4] ss:$8 sps:$4 sm:$0xff]   ;;  %s899_s21 = sshll.u32 %s341_s8, 4  ;;  %vm884_vm6 = vcmask 188416   ;;  %s897_s15 = scalar_lea.hbm %s1703_s7, %s1062_s22  ;;  %s900_s21 = int_to_ptr.vmem [resolvable:$true] %s899_s21 }
  0x56   : > { %v1224_v19 = vld [vmem:[#allocation6 + $0xf4] ss:$8 sps:$4 sm:$0xff]   ;;  %1067 = vmatpush3.bf16.msra.mxu1 %v1255_v18  ;;  %v1226_v23 = vld [vmem:[#allocation6 + $0xf0] ss:$8 sps:$4 sm:$0xff]   ;;  %v1259_v25 = vld [vmem:[#allocation8 + $0x28] sm:$0xff]   ;;  %s1362_s1 = scalar_lea.vmem %s900_s21, 16 }
  0x57   : > { %1068 = vmatprep.subr.bf16.mxu1 %v1256_v20  ;;  %v1260_v26 = vld [vmem:[#allocation8 + $0x60] sm:$0xff]   ;;  %v1230_v29 = vld [vmem:[#allocation6 + $0xd4] ss:$8 sps:$4 sm:$0xff]   ;;  %v1232_v31 = vld [vmem:[#allocation6 + $0xd0] ss:$8 sps:$4 sm:$0xff]   ;;  %p1363_p1 = scmp.ne.s32.totalorder %s900_s21, %s1362_s1  ;;  %s1456_s2 = smov [#allocation9]  }
  0x58   : > { %570 = vmatpush1.bf16.msra.mxu0 %v1208_v5  ;;  %v1229_v27 = vld [vmem:[#allocation6 + $0xe0] ss:$8 sps:$4 sm:$0xff]   ;;  %v1262_v30 = vld [vmem:[#allocation8 + $0x58] sm:$0xff]   ;;  %v1233_v33 = vld [vmem:[#allocation6 + $0xc4] ss:$8 sps:$4 sm:$0xff]   ;;  %s1366_s9 = sshll.u32 %s1456_s2, 4  ;;  %s1367_s9 = int_to_ptr.vmem [resolvable:$false] %s1366_s9 }
  0x59   : > { %571 = vmatprep.subr.bf16.mxu0 %v1209_v6  ;;  %v1261_v28 = vld [vmem:[#allocation8 + $0x20] sm:$0xff]   ;;  %v1263_v32 = vld [vmem:[#allocation8 + $0x18] sm:$0xff]   ;;  %v1264_v46 = vld [vmem:[#allocation8 + $0x50] sm:$0xff]   ;;  %p1364_p4 = pnand %p1363_p1, %p1595_p3  ;;  %s1368_s27 = scalar_lea.vmem %s1367_s9, 32 }
  0x5a   : > { %1069 = vmatpush3.bf16.msra.mxu1 %v1257_v21  ;;  %v1235_v34 = vld [vmem:[#allocation6 + $0xc0] ss:$8 sps:$4 sm:$0xff]   ;;  %v1236_v35 = vld [vmem:[#allocation6 + $0xb4] ss:$8 sps:$4 sm:$0xff]   ;;  %v1238_v36 = vld [vmem:[#allocation6 + $0xb0] ss:$8 sps:$4 sm:$0xff]   ;;  %p1369_p8 = scmp.lt.s32.totalorder %s900_s21, %s1367_s9  ;;  %p1370_p10 = scmp.lt.s32.totalorder %s1368_s27, %s1362_s1 }
  0x5b   : > { %1070 = vmatprep.subr.bf16.mxu1 %v1258_v22  ;;  %v1239_v37 = vld [vmem:[#allocation6 + $0xa4] ss:$8 sps:$4 sm:$0xff]   ;;  %v1241_v38 = vld [vmem:[#allocation6 + $0xa0] ss:$8 sps:$4 sm:$0xff]   ;;  %v1242_v39 = vld [vmem:[#allocation6 + $0x94] ss:$8 sps:$4 sm:$0xff]   ;;  %p1365_p6 = pneg %p1364_p4 }
  0x5c   : > { %572 = vmatpush1.bf16.msra.mxu0 %v1211_v7  ;;  %v1244_v40 = vld [vmem:[#allocation6 + $0x90] ss:$8 sps:$4 sm:$0xff]   ;;  %v1245_v41 = vld [vmem:[#allocation6 + $0x84] ss:$8 sps:$4 sm:$0xff]   ;;  %v1247_v42 = vld [vmem:[#allocation6 + $0x80] ss:$8 sps:$4 sm:$0xff]   ;;  %p1371_p11 = por %p1370_p10, %p1369_p8 }
  0x5d   : > { %573 = vmatprep.subr.bf16.mxu0 %v1212_v8  ;;  %v1248_v43 = vld [vmem:[%s1629_s17] ss:$8 sps:$4 sm:$0xff]   ;;  %v1251_v44 = vld [vmem:[%s1629_s17 + $0x14] ss:$8 sps:$4 sm:$0xff]   ;;  %v1253_v45 = vld [vmem:[%s1629_s17 + $0x10] ss:$8 sps:$4 sm:$0xff]  }
  0x5e   : > { %1071 = vmatpush3.bf16.msra.mxu1 %v1259_v25  ;;  %v1265_v47 = vld [vmem:[#allocation8 + $0x10] sm:$0xff]   ;;  %v1266_v48 = vld [vmem:[#allocation8 + $0x48] sm:$0xff]   ;;  %v1268_v50 = vld [vmem:[#allocation8 + $0x40] sm:$0xff]   ;;  %v1455_v8 = vmov 0.0   ;;  %s887_s17 = scalar_lea.sflag [#allocation5], %s1625_s30  ;;  %p1372_p2 = pnand %p1371_p11, %p1365_p6 }
  0x5f   : > { %1072 = vmatprep.subr.bf16.mxu1 %v1260_v26  ;;  %v1267_v49 = vld [vmem:[#allocation8 + $0x8] sm:$0xff]   ;;  %v1269_v51 = vld [vmem:[#allocation8] sm:$0xff]   ;;  %348 = vst [vmem:[#allocation2] sm:$0x1] %v1455_v8 }
  0x60   : > { %574 = vmatpush1.bf16.msra.mxu0 %v1214_v9 }
  0x61   : > { %575 = vmatprep.subr.bf16.mxu0 %v1215_v10 }
  0x62   : > { %1073 = vmatpush3.bf16.msra.mxu1 %v1261_v28 }
  0x63   : > { %1074 = vmatprep.subr.bf16.mxu1 %v1262_v30 }
  0x64   : > { %576 = vmatpush1.bf16.msra.mxu0 %v1217_v11 }
  0x65   : > { %577 = vmatprep.subr.bf16.mxu0 %v1218_v12 }
  0x66   : > { %1075 = vmatpush3.bf16.msra.mxu1 %v1263_v32  ;;  %v1061_v32 = vld [vmem:[%s1700_s4] ss:$0 sm:$0xff] }
  0x67   : > { %1076 = vmatprep.subr.bf16.mxu1 %v1264_v46 }
  0x68   : > { %578 = vmatpush1.bf16.msra.mxu0 %v1220_v14 }
  0x69   : > { %579 = vmatprep.subr.bf16.mxu0 %v1221_v15 }
  0x6a   : > { %1077 = vmatpush3.bf16.msra.mxu1 %v1265_v47 }
  0x6b   : > { %1078 = vmatprep.subr.bf16.mxu1 %v1266_v48 }
  0x6c   : > { %580 = vmatpush1.bf16.msra.mxu0 %v1223_v17 }
  0x6d   : > { %581 = vmatprep.subr.bf16.mxu0 %v1224_v19 }
  0x6e   : > { %1079 = vmatpush3.bf16.msra.mxu1 %v1267_v49 }
  0x6f   : > { %1080 = vmatprep.subr.bf16.mxu1 %v1268_v50 }
  0x70   : > { %582 = vmatpush2.bf16.msra.mxu0 %v1226_v23 }
  0x71   : > { %583 = vmatprep.subr.bf16.mxu0 %v1227_v24 }
  0x72   : > { %1081 = vmatpush3.bf16.msra.mxu1 %v1269_v51 }
  0x74   : > { %584 = vmatpush2.bf16.msra.mxu0 %v1229_v27  ;;  %v1060_v27 = vld [vmem:[%s1699_s3] ss:$0 sm:$0xff] }
  0x75   : > { %585 = vmatprep.subr.bf16.mxu0 %v1230_v29 }
  0x78   : > { %586 = vmatpush2.bf16.msra.mxu0 %v1232_v31 }
  0x79   : > { %587 = vmatprep.subr.bf16.mxu0 %v1233_v33 }
  0x7c   : > { %588 = vmatpush2.bf16.msra.mxu0 %v1235_v34 }
  0x7d   : > { %589 = vmatprep.subr.bf16.mxu0 %v1236_v35 }
  0x80   : > { %590 = vmatpush2.bf16.msra.mxu0 %v1238_v36 }
  0x81   : > { %591 = vmatprep.subr.bf16.mxu0 %v1239_v37 }
  0x84   : > { %592 = vmatpush2.bf16.msra.mxu0 %v1241_v38 }
  0x85   : > { %593 = vmatprep.subr.bf16.mxu0 %v1242_v39 }
  0x88   : > { %594 = vmatpush2.bf16.msra.mxu0 %v1244_v40 }
  0x89   : > { %595 = vmatprep.subr.bf16.mxu0 %v1245_v41 }
  0x8c   : > { %596 = vmatpush2.bf16.msra.mxu0 %v1247_v42 }
  0x8f   : > { %598 = vmatmul.mubr.bf16.vlgmr.msra.gmra.mxu0 %v1248_v43 }
  0x90   : > { %607 = vmatprep.mubr.bf16.mxu0 %v1251_v44 }
  0x97   : > { %608 = vmatmul.mubr.bf16.gmra.mxu0 %v1253_v45 }
 0x14f   : > { %v599_v52 = vpop.f32.mrf.mxu0 }
 0x150   : > { %v618_v59 = vmul.f32 %v599_v52, %v599_v52 }
 0x151   : > { %v601_v53 = vpop.f32.mrf.mxu0 }
 0x152   : > { %v619_v57 = vmul.f32 %v601_v53, %v601_v53 }
 0x153   : > { %v603_v54 = vpop.f32.mrf.mxu0 }
 0x154   : > { %v620_v55 = vmul.f32 %v603_v54, %v603_v54 }
 0x155   : > { %v605_v56 = vpop.f32.mrf.mxu0 }
 0x156   : > { %v621_v58 = vmul.f32 %v605_v56, %v605_v56  ;;  %v626_v62 = vpack.c.bf16 %v620_v55, %v618_v59 }
 0x157   : > { %v609_v60 = vpop.f32.mrf.mxu0 }
 0x158   : > { %v627_v61 = vpack.c.bf16 %v621_v58, %v619_v57  ;;  %v622_v5 = vmul.f32 %v609_v60, %v609_v60 }
 0x159   : > { %v611_v63 = vpop.f32.mrf.mxu0 }
 0x15a   : > { %790 = vmatprep.mubr.bf16.mxu1 %v627_v61  ;;  %v623_v3 = vmul.f32 %v611_v63, %v611_v63 }
 0x15b   : > { %v613_v0 = vpop.f32.mrf.mxu0  ;;  %791 = vmatmul.mubr.bf16.vlgmr.msra.gmra.mxu1 %v626_v62 }
 0x15c   : > { %v624_v1 = vmul.f32 %v613_v0, %v613_v0 }
 0x15d   : > { %v615_v2 = vpop.f32.mrf.mxu0 }
 0x15e   : > { %v625_v4 = vmul.f32 %v615_v2, %v615_v2  ;;  %v628_v7 = vpack.c.bf16 %v624_v1, %v622_v5 }
 0x160   : > { %v629_v6 = vpack.c.bf16 %v625_v4, %v623_v3  ;;  %v849_v3 = vld [vmem:[#allocation2] sm:$0x1] }
 0x162   : > { %798 = vmatprep.mubr.bf16.mxu1 %v629_v6 }
 0x163   : > { %799 = vmatmul.mubr.bf16.gmra.mxu1 %v628_v7 }
 0x21b   : > { %v1082_v9 = vpop.f32.mrf.mxu1 }
 0x21d   : > { %v1083_v10 = vpop.f32.mrf.mxu1 }
 0x21e   : > { %v1084_v11 = vadd.f32 %v1083_v10, %v1082_v9 }
 0x21f   : > { %v1085_v12 = vpop.f32.mrf.mxu1 }
 0x220   : > { %v808_v13 = vmax.f32 %v1084_v11, 1e-10 }
 0x221   : > { %v1086_v14 = vpop.f32.mrf.mxu1 }
 0x222   : > { %1270 = vlog2.f32 %v808_v13  ;;  %v1087_v15 = vadd.f32 %v1086_v14, %v1085_v12 }
 0x223   : > { %v1088_v16 = vpop.f32.mrf.mxu1 }
 0x224   : > { %v809_v17 = vmax.f32 %v1087_v15, 1e-10 }
 0x225   : > { %v1089_v18 = vpop.f32.mrf.mxu1 }
 0x226   : > { %1272 = vlog2.f32 %v809_v17  ;;  %v1090_v19 = vadd.f32 %v1089_v18, %v1088_v16 }
 0x227   : > { %v1091_v20 = vpop.f32.mrf.mxu1 }
 0x228   : > { %v810_v21 = vmax.f32 %v1090_v19, 1e-10 }
 0x229   : > { %v1092_v22 = vpop.f32.mrf.mxu1 }
 0x22a   : > { %1274 = vlog2.f32 %v810_v21  ;;  %v1093_v23 = vadd.f32 %v1092_v22, %v1091_v20  ;;  %v880_v21 = vld [vmem:[%s1701_s5] sm:$0x1] }
 0x22c   : > { %v811_v24 = vmax.f32 %v1093_v23, 1e-10  ;;  %v882_v23 = vld [vmem:[%s1702_s6] sm:$0x1] }
 0x22e   : > { %1276 = vlog2.f32 %v811_v24 }
 0x22f   : > { %v1271_v25 = vpop.eup %1270 }
 0x230   : > { %v813_v26 = vmul.f32 0.6931472, %v1271_v25 }
 0x232   : > { %v820_v28 = vmul.f32 0.4342945, %v813_v26 }
 0x233   : > { %v1273_v29 = vpop.eup %1272 }
 0x234   : > { %v830_v30 = vmul.f32 %v1060_v27, %v820_v28  ;;  %v815_v31 = vmul.f32 0.6931472, %v1273_v29 }
 0x236   : > { %v821_v33 = vmul.f32 0.4342945, %v815_v31  ;;  %v841_v35 = vadd.f32 %v1061_v32, %v830_v30 }
 0x237   : > { %v1275_v34 = vpop.eup %1274 }
 0x238   : > { %v831_v36 = vmul.f32 %v1060_v27, %v821_v33  ;;  %v817_v37 = vmul.f32 0.6931472, %v1275_v34  ;;  %v845_v41 = vmax.f32 %v841_v35, 1e-06 }
 0x23a   : > { %v842_v38 = vadd.f32 %v1061_v32, %v831_v36  ;;  %v822_v39 = vmul.f32 0.4342945, %v817_v37  ;;  %v850_v48 = vmul.f32 %v845_v41, %v845_v41 }
 0x23b   : > { %v1277_v40 = vpop.eup %1276 }
 0x23c   : > { %v846_v42 = vmax.f32 %v842_v38, 1e-06  ;;  %v832_v43 = vmul.f32 %v1060_v27, %v822_v39  ;;  %v819_v44 = vmul.f32 0.6931472, %v1277_v40  ;;  %v854_v54 = vmul.f32 %v850_v48, %v845_v41 }
 0x23e   : > { %v851_v45 = vmul.f32 %v846_v42, %v846_v42  ;;  %v843_v46 = vadd.f32 %v1061_v32, %v832_v43  ;;  %v823_v47 = vmul.f32 0.4342945, %v819_v44 }
 0x240   : > { %v847_v49 = vmax.f32 %v843_v46, 1e-06  ;;  %v833_v50 = vmul.f32 %v1060_v27, %v823_v47  ;;  %v855_v51 = vmul.f32 %v851_v45, %v846_v42 }
 0x242   : > { %v852_v52 = vmul.f32 %v847_v49, %v847_v49  ;;  %v844_v53 = vadd.f32 %v1061_v32, %v833_v50  ;;  %v858_v57 = vadd.f32 %v855_v51, %v854_v54 }
 0x244   : > { %v856_v55 = vmul.f32 %v852_v52, %v847_v49  ;;  %v848_v56 = vmax.f32 %v844_v53, 1e-06 }
 0x246   : > { %v853_v58 = vmul.f32 %v848_v56, %v848_v56  ;;  %v859_v59 = vadd.f32 %v858_v57, %v856_v55 }
 0x248   : > { %v857_v60 = vmul.f32 %v853_v58, %v848_v56 }
 0x24a   : > { %v860_v61 = vadd.f32 %v859_v59, %v857_v60 }
 0x24c   : > { %v861_v62 = vrot.slane %v860_v61, 4 }
 0x24e   : > { %v862_v63 = vadd.f32 %v861_v62, %v860_v61 }
 0x250   : > { %v863_v0 = vrot.slane %v862_v63, 2 }
 0x252   : > { %v864_v1 = vadd.f32 %v863_v0, %v862_v63 }
 0x254   : > { %v865_v2 = vrot.slane %v864_v1, 1 }
 0x256   : > { %v866_v4 = vadd.f32 %v865_v2, %v864_v1 }
 0x258   : > { %v867_v5 = vadd.f32 %v866_v4, %v849_v3 }
 0x25a   : > { %868 = vst [vmem:[#allocation2] sm:$0x1] %v867_v5 }
 0x261   : > { %v872_v6 = vld [vmem:[#allocation2] sm:$0x1] }
 0x262   : > { %v874_v7 = vsel %vm873_vm0, %v872_v6, 0.0 }
 0x263   : > { %875 = vadd.xlane.f32.xlu0 %v874_v7 }
 0x2ec   : > { %v876_v8 = vpop.xlane.xlu0 %875 }
 0x2ed   : > { %v877_v9 = vmul.f32 0.00091911765, %v876_v8 }
 0x2ef   : > { %v1096_v10 = vand.u32 2147483647, %v877_v9  ;;  %v1100_v13 = vand.u32 2147483648, %v877_v9  ;;  %vm1095_vm3 = vcmp.lt.f32.partialorder %v877_v9, 0.0  ;;  %vm1094_vm4 = vcmp.eq.f32.partialorder %v877_v9, 0.0 }
 0x2f1   : > { %1278 = vlog2.f32 %v1096_v10  ;;  %vm1104_vm1 = vweird.f32 %v1096_v10  ;;  %vm1106_vm2 = vcmp.eq.f32.partialorder %v1096_v10, 0.0  ;;  %vm1097_vm5 = vcmp.eq.f32.partialorder %v1096_v10, inf }
 0x2fe   : > { %v1279_v11 = vpop.eup %1278 }
 0x2ff   : > { %v1101_v12 = vmul.f32 0.33333334, %v1279_v11 }
 0x301   : > { %1280 = vpow2.f32 %v1101_v12 }
 0x30e   : > { %v1281_v14 = vpop.eup %1280 }
 0x30f   : > { %v1103_v15 = vor.u32 %v1281_v14, %v1100_v13 }
 0x311   : > { %v1105_v16 = vsel %vm1104_vm1, %v877_v9, %v1103_v15 }
 0x312   : > { %v1108_v17 = vsel %vm1106_vm2, %v1100_v13, %v1105_v16 }
 0x313   : > { %v1109_v18 = vsel %vm1095_vm3, nan, %v1108_v17 }
 0x314   : > { %v1110_v19 = vsel %vm1094_vm4, 0.0, %v1109_v18 }
 0x315   : > { %v1111_v20 = vsel %vm1097_vm5, inf, %v1110_v19 }
 0x316   : > { %v879_v22 = vmax.f32 %v1111_v20, 0.0 }
 0x318   : > { %v881_v24 = vmul.f32 %v880_v21, %v879_v22 }
 0x31a   : > { %v883_v25 = vadd.f32 %v882_v23, %v881_v24 }
 0x31c   : > { %885 = vst.msk [vmem:[%s341_s8] sm:$0x1] %vm884_vm6, %v883_v25 }
 0x31d   : > { %1375 = shalt.err (!%p1372_p2)
}
 0x31e   : > { %s1376_s11 = scalar_lea.hbm %s897_s15, 16  ;;  %s1380_s20 = scalar_lea.hbm %s1703_s7, 32 }
 0x31f   : > { %p1377_p9 = scmp.ne.s32.totalorder %s897_s15, %s1376_s11  ;;  %p1381_p0 = scmp.lt.s32.totalorder %s897_s15, %s1703_s7 }
 0x320   : > { %p1382_p7 = scmp.lt.s32.totalorder %s1380_s20, %s1376_s11 }
 0x321   : > { %p1378_p12 = pnand %p1377_p9, %p1595_p3 }
 0x322   : > { %p1383_p5 = por %p1382_p7, %p1381_p0 }
 0x323   : > { %p1379_p13 = pneg %p1378_p12 }
 0x325   : > { %p1384_p1 = pnand %p1383_p5, %p1379_p13 }
 0x327   : > { %1387 = shalt.err (!%p1384_p1)
}
 0x328   : > { %1122 = dma.vmem_to_hbm [thread:$0]  (%p1595_p3), %s900_s21, 16, %s897_s15, %s887_s17  }
 0x329 PF: > { %s911_s22 = sand.u32 1, %s1426_s24   ;;  %p1722_p4 = scmp.ne.s32.totalorder %s1712_s12, 0 }
 0x32a   : > { %p1723_p6 = scmp.ge.s32.totalorder %s1446_s29, 2  ;;  %s912_s8 = scalar_lea.sflag [#allocation5], %s911_s22 }
 0x32c   : > { %p1136_p8 = pnand %p1723_p6, %p1722_p4 }
 0x32e   : > { %p1137_p10 = pneg %p1136_p8 }
 0x330   : > { %1421 = dma.done.wait (%p1137_p10), %s912_s8, 16  }
 0x331   : > { %1423 = vsyncadd (%p1137_p10), %s912_s8, 4294967280  ;;  %s24_s29 = sadd.s32 1, %s1446_s29   ;;  %s1724_s23 = sld [smem:[#allocation13_spill]] }
 0x332   : > { %p21_p11 = scmp.ge.s32.totalorder %s24_s29, 4   ;;  %s1725_s24 = smov %s1430_s25 }
 0x333   : > { %s1726_s25 = smov %s1434_s26  ;;  %s1727_s26 = smov %s1604_s14 }
 0x334   : > { %s1728_s27 = smov %s1442_s28  ;;  %23 = sbr.rel (!%p21_p11) target bundleno = 10 (0xa), region = 109 }
 0x337   : > { %s1729_s28 = smov %s1724_s23 }
 0x339   :  { %916 = vsyncpa [#allocation4], 1 }
 0x33a   :  { %918 = vsyncpa [#allocation4 + $0x1], 1 }
 0x33b   :  { %919 = vsyncpa [#allocation7], 1 }
 0x33c   :  { %920 = vsyncpa [#allocation5], 1 }
 0x33d   :  { %922 = vsyncpa [#allocation5 + $0x1], 1 }

// kernel: tpu_custom_call.1
= control target key start
LH: loop header
LB: loop body
LE: loop exit
PB: predicated region body
PF: predicated region fallthrough
CT: control target
= control target key end

     0   :  { %s1696_s0 = inlined_call_operand.hbm [shape: bf16[2,32,256], index: 0, kind: input, shape index: {}]   ;;  %s1697_s1 = inlined_call_operand.hbm [shape: bf16[256,256], index: 1, kind: input, shape index: {}]   ;;  %s1698_s2 = inlined_call_operand.hbm [shape: bf16[256,128], index: 2, kind: input, shape index: {}]   ;;  %s1699_s3 = inlined_call_operand.vmem [shape: f32[1,128], index: 3, kind: input, shape index: {}]   ;;  %s1700_s4 = inlined_call_operand.vmem [shape: f32[1,128], index: 4, kind: input, shape index: {}]   ;;  %s1701_s5 = inlined_call_operand.vmem [shape: f32[1,24], index: 5, kind: input, shape index: {}]   ;;  %s1702_s6 = inlined_call_operand.vmem [shape: f32[1,24], index: 6, kind: input, shape index: {}]   ;;  %s1703_s7 = inlined_call_operand.hbm [shape: f32[2,1,24], index: 7, kind: output, shape index: {}]  }
   0x1   :  { %1707 = sst [smem:[#allocation14_spill]] %s1697_s1 }
   0x2   :  { %1708 = sst [smem:[#allocation15_spill]] %s1698_s2 }
   0x3   :  { %12 = vsyncpa [#allocation4], 0 }
   0x4   :  { %14 = vsyncpa [#allocation4 + $0x1], 0 }
   0x5   :  { %15 = vsyncpa [#allocation7], 0 }
   0x6   :  { %16 = vsyncpa [#allocation5], 0 }
   0x7   :  { %18 = vsyncpa [#allocation5 + $0x1], 0  ;;  %s1497_s24 = smov 0   ;;  %s1499_s25 = smov 0  }
   0x8   :  { %s1501_s26 = smov 0   ;;  %s1503_s27 = smov 0  }
   0x9   :  { %s1505_s28 = smov 0   ;;  %s1507_s29 = smov 0  }
   0xa LB: > { %s995_s30 = sadd.s32 4294967295, %s1446_s29   ;;  %s996_s8 = sadd.s32 4294967294, %s1446_s29   ;;  %s1446_s29 = sphi %s1507_s29, %s24_s29   ;;  %s1442_s28 = sphi %s1505_s28, %s1729_s28   ;;  %s1438_s27 = sphi %s1503_s27, %s1728_s27   ;;  %s1434_s26 = sphi %s1501_s26, %s1727_s26   ;;  %s1430_s25 = sphi %s1499_s25, %s1726_s25   ;;  %s1426_s24 = sphi %s1497_s24, %s1725_s24  }
   0xb   : > { %p58_p0 = scmp.ne.s32.totalorder %s1430_s25, %s1426_s24  ;;  %p1531_p1 = scmp.eq.s32.totalorder %s995_s30, 0 }
   0xc   : > { %p1535_p2 = scmp.eq.s32.totalorder %s995_s30, 1  ;;  %p214_p3 = scmp.eq.s32.totalorder %s996_s8, 1 }
   0xd   : > { %p1541_p4 = por %p1531_p1, %p58_p0  ;;  %p997_p5 = scmp.ge.s32.totalorder %s1446_s29, 1 }
   0xe   : > { %p1546_p6 = por %p214_p3, %p58_p0  ;;  %p221_p7 = scmp.lt.s32.totalorder %s1446_s29, 3 }
   0xf   : > { %s1448_s14 = smov [#allocation6]   ;;  %s1449_s17 = smov [#allocation8]  }
  0x10   : > { %s1712_s12 = scalar_select %p1546_p6, 1, 0 }
  0x11   : > { %p1551_p8 = pnand %p997_p5, %p221_p7  ;;  %s233_s15 = sshll.u32 %s1448_s14, 4  ;;  %s234_s15 = int_to_ptr.vmem [resolvable:$true] %s233_s15 }
  0x12   : > { %s246_s18 = sshll.u32 %s1449_s17, 4  ;;  %s1293_s19 = scalar_lea.vmem %s234_s15, 4096  ;;  %s247_s18 = int_to_ptr.vmem [resolvable:$true] %s246_s18 }
  0x13   : > { %p1124_p9 = pneg %p1551_p8  ;;  %p1294_p13 = scmp.ne.s32.totalorder %s234_s15, %s1293_s19 }
  0x14   : > { %p1301_p5 = scmp.lt.s32.totalorder %s234_s15, %s234_s15  ;;  %p1302_p7 = scmp.lt.s32.totalorder %s1293_s19, %s1293_s19 }
  0x15   : > { %p1560_p11 = pnand %p1124_p9, %p1531_p1 }
  0x16   : > { %p1303_p10 = por %p1302_p7, %p1301_p5 }
  0x17   : > { %p1284_p12 = pneg %p1560_p11 }
  0x19   : > { %p1296_p0 = pnand %p1294_p13, %p1284_p12 }
  0x1b   : > { %p1297_p3 = pneg %p1296_p0 }
  0x1d   : > { %p1304_p9 = pnand %p1303_p10, %p1297_p3 }
  0x1f   : > { %1307 = shalt.err (!%p1304_p9)
}
  0x20   : > { %s1704_s20 = smov 128   ;;  %s1705_s21 = smov 8  }
  0x21   : > { %s1715_s1 = sld [smem:[#allocation14_spill]]  ;;  %s1319_s30 = scalar_lea.vmem %s247_s18, 2048 }
  0x22   : > { %p1320_p13 = scmp.ne.s32.totalorder %s247_s18, %s1319_s30  ;;  %p1327_p10 = scmp.lt.s32.totalorder %s247_s18, %s247_s18 }
  0x23   : > { %p1328_p3 = scmp.lt.s32.totalorder %s1319_s30, %s1319_s30 }
  0x24   : > { %p1322_p0 = pnand %p1320_p13, %p1284_p12 }
  0x25   : > { %p1329_p7 = por %p1328_p3, %p1327_p10 }
  0x26   : > { %p1323_p5 = pneg %p1322_p0 }
  0x27   : > { %1127 = dma.hbm_to_vmem [thread:$0]  (!%p1560_p11), %s1715_s1, 4096, %s234_s15, [#allocation7], %s1704_s20, %s1704_s20, %s1705_s21  }
  0x28   : > { %p1330_p9 = pnand %p1329_p7, %p1323_p5 }
  0x2a   : > { %1333 = shalt.err (!%p1330_p9)
}
  0x2b   : > { %s1452_s8 = smov 64   ;;  %s1453_s14 = smov 4  }
  0x2c   : > { %s1716_s2 = sld [smem:[#allocation15_spill]]  ;;  %s36_s19 = sadd.s32 1, %s1442_s28 }
  0x2d   : > { %s45_s22 = sadd.s32 1, %s1434_s26  ;;  %p38_p12 = scmp.ge.s32.totalorder %s36_s19, 2 }
  0x2e   : > { %p52_p13 = scmp.ne.s32.totalorder %s1434_s26, %s1430_s25  ;;  %p53_p0 = scmp.eq.s32.totalorder %s1446_s29, 0 }
  0x2f   : > { %p1141_p5 = scmp.lt.s32.totalorder %s1446_s29, 2  ;;  %s1731_s19 = smov (%p38_p12, %s36_s19), 0 }
  0x30   : > { %1717 = sst [smem:[#allocation13_spill]] %s1731_s19  ;;  %p54_p10 = por %p53_p0, %p52_p13 }
  0x31   : > { %p1595_p3 = por %p1535_p2, %p52_p13  ;;  %s40_s16 = ssub.s32 %s1442_s28, %s1731_s19 }
  0x32   : > { %1130 = dma.hbm_to_vmem [thread:$0]  (!%p1560_p11), %s1716_s2, 2048, %s247_s18, [#allocation7], %s1452_s8, %s1452_s8, %s1453_s14  }
  0x33   : > { %s272_s30 = sand.u32 1, %s1434_s26   ;;  %p43_p7 = scmp.eq.s32.totalorder %s40_s16, 0 }
  0x34   : > { %s1001_s18 = sshll.u32 %s272_s30, 5  ;;  %s1065_s8 = sshll.u32 %s1442_s28, 9 }
  0x35   : > { %s1604_s14 = scalar_select %p43_p7, %s1434_s26, %s45_s22  }
  0x36   : > { %s285_s20 = scalar_lea.hbm %s1696_s0, %s1065_s8  ;;  %s276_s21 = scalar_lea.vmem [#allocation3], %s1001_s18 }
  0x37   : > { %s286_s1 = sshll.u32 %s276_s21, 4  ;;  %p1611_p11 = pnand %p1141_p5, %p54_p10  ;;  %s287_s1 = int_to_ptr.vmem [resolvable:$true] %s286_s1 }
  0x38   : > { %s273_s2 = scalar_lea.sflag [#allocation4], %s272_s30  ;;  %s1347_s16 = scalar_lea.vmem %s287_s1, 512 }
  0x39   : > { %p1336_p2 = pneg %p1611_p11  ;;  %p1348_p9 = scmp.ne.s32.totalorder %s287_s1, %s1347_s16 }
  0x3a   : > { %s1454_s22 = smov [#allocation3]  }
  0x3b   : > { %p1350_p12 = pnand %p1348_p9, %p1336_p2  ;;  %s1352_s19 = sshll.u32 %s1454_s22, 4  ;;  %s1353_s19 = int_to_ptr.vmem [resolvable:$false] %s1352_s19 }
  0x3c   : > { %s1354_s8 = scalar_lea.vmem %s1353_s19, 1024  ;;  %p1355_p0 = scmp.lt.s32.totalorder %s287_s1, %s1353_s19 }
  0x3d   : > { %p1351_p13 = pneg %p1350_p12  ;;  %p1356_p7 = scmp.lt.s32.totalorder %s1354_s8, %s1347_s16 }
  0x3f   : > { %p1357_p6 = por %p1356_p7, %p1355_p0 }
  0x41   : > { %p1358_p5 = pnand %p1357_p6, %p1351_p13 }
  0x43   : > { %1361 = shalt.err (!%p1358_p5)
}
  0x44   : > { %s1720_s21 = smov 8   ;;  %s1721_s18 = smov 128  }
  0x45   : > { %1134 = dma.hbm_to_vmem [thread:$0]  (!%p1611_p11), %s285_s20, 512, %s287_s1, %s273_s2, %s1721_s18, %s1721_s18, %s1720_s21  }
  0x46   : > { %298 = sbr.rel (%p1551_p8) target bundleno = 809 (0x329), region = 48  ;;  %s1625_s30 = sand.u32 (!%p1551_p8), 1, %s1430_s25  }
  0x47   : > { %s1005_s19 = sshll.u32 (!%p1551_p8), %s1625_s30, 5  ;;  %s301_s15 = scalar_lea.sflag (!%p1551_p8), [#allocation4], %s1625_s30 }
  0x48   : > { %s1629_s17 = scalar_lea.vmem (!%p1551_p8), [#allocation3], %s1005_s19 }
  0x4b   : > { %1413 = dma.done.wait (%p1541_p4), %s301_s15, 512  }
  0x4c   : > { %1415 = vsyncadd (%p1541_p4), %s301_s15, 4294966784 }
  0x4d   : > { %1417 = dma.done.wait (%p1531_p1), [#allocation7], 6144  }
  0x4e   : > { %1419 = vsyncadd (%p1531_p1), [#allocation7], 4294961152  ;;  %v1200_v0 = vld [vmem:[#allocation6 + $0x74] ss:$8 sps:$4 sm:$0xff]   ;;  %v1202_v1 = vld [vmem:[#allocation6 + $0x70] ss:$8 sps:$4 sm:$0xff]  }
  0x4f   : > { %565 = vmatprep.subr.bf16.mxu0 %v1200_v0  ;;  %v1203_v2 = vld [vmem:[#allocation6 + $0x64] ss:$8 sps:$4 sm:$0xff]   ;;  %v1205_v3 = vld [vmem:[#allocation6 + $0x60] ss:$8 sps:$4 sm:$0xff]   ;;  %v1206_v4 = vld [vmem:[#allocation6 + $0x54] ss:$8 sps:$4 sm:$0xff]  }
  0x50   : > { %566 = vmatpush1.bf16.msra.mxu0 %v1202_v1  ;;  %v1208_v5 = vld [vmem:[#allocation6 + $0x50] ss:$8 sps:$4 sm:$0xff]   ;;  %v1209_v6 = vld [vmem:[#allocation6 + $0x44] ss:$8 sps:$4 sm:$0xff]   ;;  %v1211_v7 = vld [vmem:[#allocation6 + $0x40] ss:$8 sps:$4 sm:$0xff]  }
  0x51   : > { %567 = vmatprep.subr.bf16.mxu0 %v1203_v2  ;;  %v1212_v8 = vld [vmem:[#allocation6 + $0x34] ss:$8 sps:$4 sm:$0xff]   ;;  %v1214_v9 = vld [vmem:[#allocation6 + $0x30] ss:$8 sps:$4 sm:$0xff]   ;;  %v1215_v10 = vld [vmem:[#allocation6 + $0x24] ss:$8 sps:$4 sm:$0xff]  }
  0x52   : > { %v1217_v11 = vld [vmem:[#allocation6 + $0x20] ss:$8 sps:$4 sm:$0xff]   ;;  %v1218_v12 = vld [vmem:[#allocation6 + $0x14] ss:$8 sps:$4 sm:$0xff]   ;;  %v1250_v13 = vld [vmem:[%s1629_s17 + $0x4] ss:$8 sps:$4 sm:$0xff]  }
  0x53   : > { %v1220_v14 = vld [vmem:[#allocation6 + $0x10] ss:$8 sps:$4 sm:$0xff]   ;;  %v1221_v15 = vld [vmem:[#allocation6 + $0x4] ss:$8 sps:$4 sm:$0xff]   ;;  %597 = vmatprep.mubr.bf16.mxu0 %v1250_v13  ;;  %v1223_v17 = vld [vmem:[#allocation6] ss:$8 sps:$4 sm:$0xff]  }
  0x54   : > { %568 = vmatpush1.bf16.msra.mxu0 %v1205_v3  ;;  %v1254_v16 = vld [vmem:[#allocation8 + $0x78] sm:$0xff]   ;;  %v1256_v20 = vld [vmem:[#allocation8 + $0x70] sm:$0xff]   ;;  %v1258_v22 = vld [vmem:[#allocation8 + $0x68] sm:$0xff]   ;;  %vm873_vm0 = vcmask 1040384   ;;  %s1062_s22 = sshll.u32 %s1438_s27, 4  ;;  %s341_s8 = scalar_lea.vmem [#allocation9], %s1625_s30 }
  0x55   : > { %569 = vmatprep.subr.bf16.mxu0 %v1206_v4  ;;  %v1255_v18 = vld [vmem:[#allocation8 + $0x38] sm:$0xff]   ;;  %1066 = vmatprep.subr.bf16.mxu1 %v1254_v16  ;;  %v1257_v21 = vld [vmem:[#allocation8 + $0x30] sm:$0xff]   ;;  %v1227_v24 = vld [vmem:[#allocation6 + $0xe4] ss:$8 sps:$4 sm:$0xff]   ;;  %s899_s21 = sshll.u32 %s341_s8, 4  ;;  %vm884_vm6 = vcmask 188416   ;;  %s897_s15 = scalar_lea.hbm %s1703_s7, %s1062_s22  ;;  %s900_s21 = int_to_ptr.vmem [resolvable:$true] %s899_s21 }
  0x56   : > { %v1224_v19 = vld [vmem:[#allocation6 + $0xf4] ss:$8 sps:$4 sm:$0xff]   ;;  %1067 = vmatpush3.bf16.msra.mxu1 %v1255_v18  ;;  %v1226_v23 = vld [vmem:[#allocation6 + $0xf0] ss:$8 sps:$4 sm:$0xff]   ;;  %v1259_v25 = vld [vmem:[#allocation8 + $0x28] sm:$0xff]   ;;  %s1362_s1 = scalar_lea.vmem %s900_s21, 16 }
  0x57   : > { %1068 = vmatprep.subr.bf16.mxu1 %v1256_v20  ;;  %v1260_v26 = vld [vmem:[#allocation8 + $0x60] sm:$0xff]   ;;  %v1230_v29 = vld [vmem:[#allocation6 + $0xd4] ss:$8 sps:$4 sm:$0xff]   ;;  %v1232_v31 = vld [vmem:[#allocation6 + $0xd0] ss:$8 sps:$4 sm:$0xff]   ;;  %p1363_p1 = scmp.ne.s32.totalorder %s900_s21, %s1362_s1  ;;  %s1456_s2 = smov [#allocation9]  }
  0x58   : > { %570 = vmatpush1.bf16.msra.mxu0 %v1208_v5  ;;  %v1229_v27 = vld [vmem:[#allocation6 + $0xe0] ss:$8 sps:$4 sm:$0xff]   ;;  %v1262_v30 = vld [vmem:[#allocation8 + $0x58] sm:$0xff]   ;;  %v1233_v33 = vld [vmem:[#allocation6 + $0xc4] ss:$8 sps:$4 sm:$0xff]   ;;  %s1366_s9 = sshll.u32 %s1456_s2, 4  ;;  %s1367_s9 = int_to_ptr.vmem [resolvable:$false] %s1366_s9 }
  0x59   : > { %571 = vmatprep.subr.bf16.mxu0 %v1209_v6  ;;  %v1261_v28 = vld [vmem:[#allocation8 + $0x20] sm:$0xff]   ;;  %v1263_v32 = vld [vmem:[#allocation8 + $0x18] sm:$0xff]   ;;  %v1264_v46 = vld [vmem:[#allocation8 + $0x50] sm:$0xff]   ;;  %p1364_p4 = pnand %p1363_p1, %p1595_p3  ;;  %s1368_s27 = scalar_lea.vmem %s1367_s9, 32 }
  0x5a   : > { %1069 = vmatpush3.bf16.msra.mxu1 %v1257_v21  ;;  %v1235_v34 = vld [vmem:[#allocation6 + $0xc0] ss:$8 sps:$4 sm:$0xff]   ;;  %v1236_v35 = vld [vmem:[#allocation6 + $0xb4] ss:$8 sps:$4 sm:$0xff]   ;;  %v1238_v36 = vld [vmem:[#allocation6 + $0xb0] ss:$8 sps:$4 sm:$0xff]   ;;  %p1369_p8 = scmp.lt.s32.totalorder %s900_s21, %s1367_s9  ;;  %p1370_p10 = scmp.lt.s32.totalorder %s1368_s27, %s1362_s1 }
  0x5b   : > { %1070 = vmatprep.subr.bf16.mxu1 %v1258_v22  ;;  %v1239_v37 = vld [vmem:[#allocation6 + $0xa4] ss:$8 sps:$4 sm:$0xff]   ;;  %v1241_v38 = vld [vmem:[#allocation6 + $0xa0] ss:$8 sps:$4 sm:$0xff]   ;;  %v1242_v39 = vld [vmem:[#allocation6 + $0x94] ss:$8 sps:$4 sm:$0xff]   ;;  %p1365_p6 = pneg %p1364_p4 }
  0x5c   : > { %572 = vmatpush1.bf16.msra.mxu0 %v1211_v7  ;;  %v1244_v40 = vld [vmem:[#allocation6 + $0x90] ss:$8 sps:$4 sm:$0xff]   ;;  %v1245_v41 = vld [vmem:[#allocation6 + $0x84] ss:$8 sps:$4 sm:$0xff]   ;;  %v1247_v42 = vld [vmem:[#allocation6 + $0x80] ss:$8 sps:$4 sm:$0xff]   ;;  %p1371_p11 = por %p1370_p10, %p1369_p8 }
  0x5d   : > { %573 = vmatprep.subr.bf16.mxu0 %v1212_v8  ;;  %v1248_v43 = vld [vmem:[%s1629_s17] ss:$8 sps:$4 sm:$0xff]   ;;  %v1251_v44 = vld [vmem:[%s1629_s17 + $0x14] ss:$8 sps:$4 sm:$0xff]   ;;  %v1253_v45 = vld [vmem:[%s1629_s17 + $0x10] ss:$8 sps:$4 sm:$0xff]  }
  0x5e   : > { %1071 = vmatpush3.bf16.msra.mxu1 %v1259_v25  ;;  %v1265_v47 = vld [vmem:[#allocation8 + $0x10] sm:$0xff]   ;;  %v1266_v48 = vld [vmem:[#allocation8 + $0x48] sm:$0xff]   ;;  %v1268_v50 = vld [vmem:[#allocation8 + $0x40] sm:$0xff]   ;;  %v1455_v8 = vmov 0.0   ;;  %s887_s17 = scalar_lea.sflag [#allocation5], %s1625_s30  ;;  %p1372_p2 = pnand %p1371_p11, %p1365_p6 }
  0x5f   : > { %1072 = vmatprep.subr.bf16.mxu1 %v1260_v26  ;;  %v1267_v49 = vld [vmem:[#allocation8 + $0x8] sm:$0xff]   ;;  %v1269_v51 = vld [vmem:[#allocation8] sm:$0xff]   ;;  %348 = vst [vmem:[#allocation2] sm:$0x1] %v1455_v8 }
  0x60   : > { %574 = vmatpush1.bf16.msra.mxu0 %v1214_v9 }
  0x61   : > { %575 = vmatprep.subr.bf16.mxu0 %v1215_v10 }
  0x62   : > { %1073 = vmatpush3.bf16.msra.mxu1 %v1261_v28 }
  0x63   : > { %1074 = vmatprep.subr.bf16.mxu1 %v1262_v30 }
  0x64   : > { %576 = vmatpush1.bf16.msra.mxu0 %v1217_v11 }
  0x65   : > { %577 = vmatprep.subr.bf16.mxu0 %v1218_v12 }
  0x66   : > { %1075 = vmatpush3.bf16.msra.mxu1 %v1263_v32  ;;  %v1061_v32 = vld [vmem:[%s1700_s4] ss:$0 sm:$0xff] }
  0x67   : > { %1076 = vmatprep.subr.bf16.mxu1 %v1264_v46 }
  0x68   : > { %578 = vmatpush1.bf16.msra.mxu0 %v1220_v14 }
  0x69   : > { %579 = vmatprep.subr.bf16.mxu0 %v1221_v15 }
  0x6a   : > { %1077 = vmatpush3.bf16.msra.mxu1 %v1265_v47 }
  0x6b   : > { %1078 = vmatprep.subr.bf16.mxu1 %v1266_v48 }
  0x6c   : > { %580 = vmatpush1.bf16.msra.mxu0 %v1223_v17 }
  0x6d   : > { %581 = vmatprep.subr.bf16.mxu0 %v1224_v19 }
  0x6e   : > { %1079 = vmatpush3.bf16.msra.mxu1 %v1267_v49 }
  0x6f   : > { %1080 = vmatprep.subr.bf16.mxu1 %v1268_v50 }
  0x70   : > { %582 = vmatpush2.bf16.msra.mxu0 %v1226_v23 }
  0x71   : > { %583 = vmatprep.subr.bf16.mxu0 %v1227_v24 }
  0x72   : > { %1081 = vmatpush3.bf16.msra.mxu1 %v1269_v51 }
  0x74   : > { %584 = vmatpush2.bf16.msra.mxu0 %v1229_v27  ;;  %v1060_v27 = vld [vmem:[%s1699_s3] ss:$0 sm:$0xff] }
  0x75   : > { %585 = vmatprep.subr.bf16.mxu0 %v1230_v29 }
  0x78   : > { %586 = vmatpush2.bf16.msra.mxu0 %v1232_v31 }
  0x79   : > { %587 = vmatprep.subr.bf16.mxu0 %v1233_v33 }
  0x7c   : > { %588 = vmatpush2.bf16.msra.mxu0 %v1235_v34 }
  0x7d   : > { %589 = vmatprep.subr.bf16.mxu0 %v1236_v35 }
  0x80   : > { %590 = vmatpush2.bf16.msra.mxu0 %v1238_v36 }
  0x81   : > { %591 = vmatprep.subr.bf16.mxu0 %v1239_v37 }
  0x84   : > { %592 = vmatpush2.bf16.msra.mxu0 %v1241_v38 }
  0x85   : > { %593 = vmatprep.subr.bf16.mxu0 %v1242_v39 }
  0x88   : > { %594 = vmatpush2.bf16.msra.mxu0 %v1244_v40 }
  0x89   : > { %595 = vmatprep.subr.bf16.mxu0 %v1245_v41 }
  0x8c   : > { %596 = vmatpush2.bf16.msra.mxu0 %v1247_v42 }
  0x8f   : > { %598 = vmatmul.mubr.bf16.vlgmr.msra.gmra.mxu0 %v1248_v43 }
  0x90   : > { %607 = vmatprep.mubr.bf16.mxu0 %v1251_v44 }
  0x97   : > { %608 = vmatmul.mubr.bf16.gmra.mxu0 %v1253_v45 }
 0x14f   : > { %v599_v52 = vpop.f32.mrf.mxu0 }
 0x150   : > { %v618_v59 = vmul.f32 %v599_v52, %v599_v52 }
 0x151   : > { %v601_v53 = vpop.f32.mrf.mxu0 }
 0x152   : > { %v619_v57 = vmul.f32 %v601_v53, %v601_v53 }
 0x153   : > { %v603_v54 = vpop.f32.mrf.mxu0 }
 0x154   : > { %v620_v55 = vmul.f32 %v603_v54, %v603_v54 }
 0x155   : > { %v605_v56 = vpop.f32.mrf.mxu0 }
 0x156   : > { %v621_v58 = vmul.f32 %v605_v56, %v605_v56  ;;  %v626_v62 = vpack.c.bf16 %v620_v55, %v618_v59 }
 0x157   : > { %v609_v60 = vpop.f32.mrf.mxu0 }
 0x158   : > { %v627_v61 = vpack.c.bf16 %v621_v58, %v619_v57  ;;  %v622_v5 = vmul.f32 %v609_v60, %v609_v60 }
 0x159   : > { %v611_v63 = vpop.f32.mrf.mxu0 }
 0x15a   : > { %790 = vmatprep.mubr.bf16.mxu1 %v627_v61  ;;  %v623_v3 = vmul.f32 %v611_v63, %v611_v63 }
 0x15b   : > { %v613_v0 = vpop.f32.mrf.mxu0  ;;  %791 = vmatmul.mubr.bf16.vlgmr.msra.gmra.mxu1 %v626_v62 }
 0x15c   : > { %v624_v1 = vmul.f32 %v613_v0, %v613_v0 }
 0x15d   : > { %v615_v2 = vpop.f32.mrf.mxu0 }
 0x15e   : > { %v625_v4 = vmul.f32 %v615_v2, %v615_v2  ;;  %v628_v7 = vpack.c.bf16 %v624_v1, %v622_v5 }
 0x160   : > { %v629_v6 = vpack.c.bf16 %v625_v4, %v623_v3  ;;  %v849_v3 = vld [vmem:[#allocation2] sm:$0x1] }
 0x162   : > { %798 = vmatprep.mubr.bf16.mxu1 %v629_v6 }
 0x163   : > { %799 = vmatmul.mubr.bf16.gmra.mxu1 %v628_v7 }
 0x21b   : > { %v1082_v9 = vpop.f32.mrf.mxu1 }
 0x21d   : > { %v1083_v10 = vpop.f32.mrf.mxu1 }
 0x21e   : > { %v1084_v11 = vadd.f32 %v1083_v10, %v1082_v9 }
 0x21f   : > { %v1085_v12 = vpop.f32.mrf.mxu1 }
 0x220   : > { %v808_v13 = vmax.f32 %v1084_v11, 1e-10 }
 0x221   : > { %v1086_v14 = vpop.f32.mrf.mxu1 }
 0x222   : > { %1270 = vlog2.f32 %v808_v13  ;;  %v1087_v15 = vadd.f32 %v1086_v14, %v1085_v12 }
 0x223   : > { %v1088_v16 = vpop.f32.mrf.mxu1 }
 0x224   : > { %v809_v17 = vmax.f32 %v1087_v15, 1e-10 }
 0x225   : > { %v1089_v18 = vpop.f32.mrf.mxu1 }
 0x226   : > { %1272 = vlog2.f32 %v809_v17  ;;  %v1090_v19 = vadd.f32 %v1089_v18, %v1088_v16 }
 0x227   : > { %v1091_v20 = vpop.f32.mrf.mxu1 }
 0x228   : > { %v810_v21 = vmax.f32 %v1090_v19, 1e-10 }
 0x229   : > { %v1092_v22 = vpop.f32.mrf.mxu1 }
 0x22a   : > { %1274 = vlog2.f32 %v810_v21  ;;  %v1093_v23 = vadd.f32 %v1092_v22, %v1091_v20  ;;  %v880_v21 = vld [vmem:[%s1701_s5] sm:$0x1] }
 0x22c   : > { %v811_v24 = vmax.f32 %v1093_v23, 1e-10  ;;  %v882_v23 = vld [vmem:[%s1702_s6] sm:$0x1] }
 0x22e   : > { %1276 = vlog2.f32 %v811_v24 }
 0x22f   : > { %v1271_v25 = vpop.eup %1270 }
 0x230   : > { %v813_v26 = vmul.f32 0.6931472, %v1271_v25 }
 0x232   : > { %v820_v28 = vmul.f32 0.4342945, %v813_v26 }
 0x233   : > { %v1273_v29 = vpop.eup %1272 }
 0x234   : > { %v830_v30 = vmul.f32 %v1060_v27, %v820_v28  ;;  %v815_v31 = vmul.f32 0.6931472, %v1273_v29 }
 0x236   : > { %v821_v33 = vmul.f32 0.4342945, %v815_v31  ;;  %v841_v35 = vadd.f32 %v1061_v32, %v830_v30 }
 0x237   : > { %v1275_v34 = vpop.eup %1274 }
 0x238   : > { %v831_v36 = vmul.f32 %v1060_v27, %v821_v33  ;;  %v817_v37 = vmul.f32 0.6931472, %v1275_v34  ;;  %v845_v41 = vmax.f32 %v841_v35, 1e-06 }
 0x23a   : > { %v842_v38 = vadd.f32 %v1061_v32, %v831_v36  ;;  %v822_v39 = vmul.f32 0.4342945, %v817_v37  ;;  %v850_v48 = vmul.f32 %v845_v41, %v845_v41 }
 0x23b   : > { %v1277_v40 = vpop.eup %1276 }
 0x23c   : > { %v846_v42 = vmax.f32 %v842_v38, 1e-06  ;;  %v832_v43 = vmul.f32 %v1060_v27, %v822_v39  ;;  %v819_v44 = vmul.f32 0.6931472, %v1277_v40  ;;  %v854_v54 = vmul.f32 %v850_v48, %v845_v41 }
 0x23e   : > { %v851_v45 = vmul.f32 %v846_v42, %v846_v42  ;;  %v843_v46 = vadd.f32 %v1061_v32, %v832_v43  ;;  %v823_v47 = vmul.f32 0.4342945, %v819_v44 }
 0x240   : > { %v847_v49 = vmax.f32 %v843_v46, 1e-06  ;;  %v833_v50 = vmul.f32 %v1060_v27, %v823_v47  ;;  %v855_v51 = vmul.f32 %v851_v45, %v846_v42 }
 0x242   : > { %v852_v52 = vmul.f32 %v847_v49, %v847_v49  ;;  %v844_v53 = vadd.f32 %v1061_v32, %v833_v50  ;;  %v858_v57 = vadd.f32 %v855_v51, %v854_v54 }
 0x244   : > { %v856_v55 = vmul.f32 %v852_v52, %v847_v49  ;;  %v848_v56 = vmax.f32 %v844_v53, 1e-06 }
 0x246   : > { %v853_v58 = vmul.f32 %v848_v56, %v848_v56  ;;  %v859_v59 = vadd.f32 %v858_v57, %v856_v55 }
 0x248   : > { %v857_v60 = vmul.f32 %v853_v58, %v848_v56 }
 0x24a   : > { %v860_v61 = vadd.f32 %v859_v59, %v857_v60 }
 0x24c   : > { %v861_v62 = vrot.slane %v860_v61, 4 }
 0x24e   : > { %v862_v63 = vadd.f32 %v861_v62, %v860_v61 }
 0x250   : > { %v863_v0 = vrot.slane %v862_v63, 2 }
 0x252   : > { %v864_v1 = vadd.f32 %v863_v0, %v862_v63 }
 0x254   : > { %v865_v2 = vrot.slane %v864_v1, 1 }
 0x256   : > { %v866_v4 = vadd.f32 %v865_v2, %v864_v1 }
 0x258   : > { %v867_v5 = vadd.f32 %v866_v4, %v849_v3 }
 0x25a   : > { %868 = vst [vmem:[#allocation2] sm:$0x1] %v867_v5 }
 0x261   : > { %v872_v6 = vld [vmem:[#allocation2] sm:$0x1] }
 0x262   : > { %v874_v7 = vsel %vm873_vm0, %v872_v6, 0.0 }
 0x263   : > { %875 = vadd.xlane.f32.xlu0 %v874_v7 }
 0x2ec   : > { %v876_v8 = vpop.xlane.xlu0 %875 }
 0x2ed   : > { %v877_v9 = vmul.f32 0.00091911765, %v876_v8 }
 0x2ef   : > { %v1096_v10 = vand.u32 2147483647, %v877_v9  ;;  %v1100_v13 = vand.u32 2147483648, %v877_v9  ;;  %vm1095_vm3 = vcmp.lt.f32.partialorder %v877_v9, 0.0  ;;  %vm1094_vm4 = vcmp.eq.f32.partialorder %v877_v9, 0.0 }
 0x2f1   : > { %1278 = vlog2.f32 %v1096_v10  ;;  %vm1104_vm1 = vweird.f32 %v1096_v10  ;;  %vm1106_vm2 = vcmp.eq.f32.partialorder %v1096_v10, 0.0  ;;  %vm1097_vm5 = vcmp.eq.f32.partialorder %v1096_v10, inf }
 0x2fe   : > { %v1279_v11 = vpop.eup %1278 }
 0x2ff   : > { %v1101_v12 = vmul.f32 0.33333334, %v1279_v11 }
 0x301   : > { %1280 = vpow2.f32 %v1101_v12 }
 0x30e   : > { %v1281_v14 = vpop.eup %1280 }
 0x30f   : > { %v1103_v15 = vor.u32 %v1281_v14, %v1100_v13 }
 0x311   : > { %v1105_v16 = vsel %vm1104_vm1, %v877_v9, %v1103_v15 }
 0x312   : > { %v1108_v17 = vsel %vm1106_vm2, %v1100_v13, %v1105_v16 }
 0x313   : > { %v1109_v18 = vsel %vm1095_vm3, nan, %v1108_v17 }
 0x314   : > { %v1110_v19 = vsel %vm1094_vm4, 0.0, %v1109_v18 }
 0x315   : > { %v1111_v20 = vsel %vm1097_vm5, inf, %v1110_v19 }
 0x316   : > { %v879_v22 = vmax.f32 %v1111_v20, 0.0 }
 0x318   : > { %v881_v24 = vmul.f32 %v880_v21, %v879_v22 }
 0x31a   : > { %v883_v25 = vadd.f32 %v882_v23, %v881_v24 }
 0x31c   : > { %885 = vst.msk [vmem:[%s341_s8] sm:$0x1] %vm884_vm6, %v883_v25 }
 0x31d   : > { %1375 = shalt.err (!%p1372_p2)
}
 0x31e   : > { %s1376_s11 = scalar_lea.hbm %s897_s15, 16  ;;  %s1380_s20 = scalar_lea.hbm %s1703_s7, 32 }
 0x31f   : > { %p1377_p9 = scmp.ne.s32.totalorder %s897_s15, %s1376_s11  ;;  %p1381_p0 = scmp.lt.s32.totalorder %s897_s15, %s1703_s7 }
 0x320   : > { %p1382_p7 = scmp.lt.s32.totalorder %s1380_s20, %s1376_s11 }
 0x321   : > { %p1378_p12 = pnand %p1377_p9, %p1595_p3 }
 0x322   : > { %p1383_p5 = por %p1382_p7, %p1381_p0 }
 0x323   : > { %p1379_p13 = pneg %p1378_p12 }
 0x325   : > { %p1384_p1 = pnand %p1383_p5, %p1379_p13 }
 0x327   : > { %1387 = shalt.err (!%p1384_p1)
}
 0x328   : > { %1122 = dma.vmem_to_hbm [thread:$0]  (%p1595_p3), %s900_s21, 16, %s897_s15, %s887_s17  }
 0x329 PF: > { %s911_s22 = sand.u32 1, %s1426_s24   ;;  %p1722_p4 = scmp.ne.s32.totalorder %s1712_s12, 0 }
 0x32a   : > { %p1723_p6 = scmp.ge.s32.totalorder %s1446_s29, 2  ;;  %s912_s8 = scalar_lea.sflag [#allocation5], %s911_s22 }
 0x32c   : > { %p1136_p8 = pnand %p1723_p6, %p1722_p4 }
 0x32e   : > { %p1137_p10 = pneg %p1136_p8 }
 0x330   : > { %1421 = dma.done.wait (%p1137_p10), %s912_s8, 16  }
 0x331   : > { %1423 = vsyncadd (%p1137_p10), %s912_s8, 4294967280  ;;  %s24_s29 = sadd.s32 1, %s1446_s29   ;;  %s1724_s23 = sld [smem:[#allocation13_spill]] }
 0x332   : > { %p21_p11 = scmp.ge.s32.totalorder %s24_s29, 4   ;;  %s1725_s24 = smov %s1430_s25 }
 0x333   : > { %s1726_s25 = smov %s1434_s26  ;;  %s1727_s26 = smov %s1604_s14 }
 0x334   : > { %s1728_s27 = smov %s1442_s28  ;;  %23 = sbr.rel (!%p21_p11) target bundleno = 10 (0xa), region = 109 }
 0x337   : > { %s1729_s28 = smov %s1724_s23 }
 0x339   :  { %916 = vsyncpa [#allocation4], 1 }
 0x33a   :  { %918 = vsyncpa [#allocation4 + $0x1], 1 }
 0x33b   :  { %919 = vsyncpa [#allocation7], 1 }
 0x33c   :  { %920 = vsyncpa [#allocation5], 1 }
 0x33d   :  { %922 = vsyncpa [#allocation5 + $0x1], 1 }

</bundles_post_ra>
